<compile_context>
chip_gen: v6e
topology: v6e:2x2x1
jax: 0.10.0
libtpu: 0.0.40
codegen_flags: <defaults>
</compile_context>

<pallas_src>
import functools

import jax
import jax.numpy as jnp
from jax.experimental import pallas as pl
from jax.experimental.pallas import tpu as pltpu


_CPARAMS = pltpu.CompilerParams(
    dimension_semantics=("parallel",),
    vmem_limit_bytes=32 * 1024 * 1024,
)


def _gelu(x):
    # exact (erf-based) GELU, matching torch.nn.GELU / F.gelu defaults
    return 0.5 * x * (1.0 + jax.lax.erf(x * jnp.float32(0.7071067811865476)))


def _two_layer(x, w1, b1, w2, b2):
    # TwoLayerNN with BatchNorm folded into (w1, b1):
    #   Linear -> (BN folded) -> GELU -> Linear, + residual
    # bf16 matmul operands, f32 accumulation.
    h = jnp.dot(x.astype(jnp.bfloat16), w1, preferred_element_type=jnp.float32) + b1
    h = _gelu(h)
    y = jnp.dot(h.astype(jnp.bfloat16), w2, preferred_element_type=jnp.float32) + b2
    return y + x


def _sim_in1_kernel(x_ref, w1, b1, w2, b2, sim_ref, x1_ref):
    x = x_ref[...]                                         # (N, C) f32
    # sim = x @ x^T without materializing a transpose (contract last dims).
    sim_ref[...] = jax.lax.dot_general(
        x, x, (((1,), (1,)), ((), ())), preferred_element_type=jnp.float32)
    # in_layer1 (TwoLayerNN, BN folded)
    x1_ref[...] = _two_layer(x, w1[...], b1[...], w2[...], b2[...])


def _agg_fc_kernel(x1_ref, g_ref, we_ref, wo_ref, fb_ref, y_ref, *, k):
    x1 = x1_ref[...]                                       # (N, C) f32
    g = g_ref[...]                                         # (N, k) int32
    n = x1.shape[0]

    # Online neighbour max: k exact one-hot row gathers (MXU) with a running
    # (N, C) max -- no (N, N, C) temporary, no dense mask shipped from HBM.
    col = jax.lax.broadcasted_iota(jnp.int32, (n, n), 1)
    nbr_max = None
    for j in range(k):                                     # k is small & static
        onehot = (col == g[:, j:j + 1]).astype(jnp.float32)        # (N, N)
        gathered = jnp.dot(onehot, x1, preferred_element_type=jnp.float32)
        nbr_max = gathered if nbr_max is None else jnp.maximum(nbr_max, gathered)
    agg = nbr_max - x1                                     # amax_j(x1[g[i,j]] - x1[i])

    # multi_head_fc: Conv1d(2C, C, 1) over interleaved (x1, agg) channels.
    y = (jnp.dot(x1.astype(jnp.bfloat16), we_ref[...],
                 preferred_element_type=jnp.float32)
         + jnp.dot(agg.astype(jnp.bfloat16), wo_ref[...],
                   preferred_element_type=jnp.float32)
         + fb_ref[...])
    y_ref[...] = y


def _tail_kernel(y_ref, x_ref,
                 o1_w1, o1_b1, o1_w2, o1_b2,
                 i2_w1, i2_b1, i2_w2, i2_b2,
                 o2_w1, o2_b1, o2_w2, o2_b2,
                 out_ref):
    shortcut = x_ref[...]                                  # (TM, C)
    g = _gelu(y_ref[...])
    x3 = _two_layer(g, o1_w1[...], o1_b1[...], o1_w2[...], o1_b2[...])
    x4 = x3 + shortcut
    t = _two_layer(x4, i2_w1[...], i2_b1[...], i2_w2[...], i2_b2[...])
    u = _gelu(t)
    v = _two_layer(u, o2_w1[...], o2_b1[...], o2_w2[...], o2_b2[...])
    out_ref[...] = v + x4


def _const_spec(p):
    # full-array block, constant index map (weights stay VMEM-resident)
    return pl.BlockSpec(p.shape, lambda *_, nd=p.ndim: (0,) * nd)


def _row_tile(rows):
    # largest multiple-of-8 divisor of `rows` (<=512), preferring >=2 grid steps
    best = None
    for tm in (512, 256, 128, 64, 32, 16, 8):
        if rows % tm == 0:
            if rows // tm >= 2:
                return tm
            if best is None:
                best = tm
    return best if best is not None else rows


def vig_block(x, params, k):
    B, N, C = x.shape
    R = B * N

    in1 = params["in_layer1"]
    fc = params["fc"]
    tail = params["out_layer1"] + params["in_layer2"] + params["out_layer2"]

    # ---- stage 1: per-image similarity + in_layer1 ----
    sim, x1 = pl.pallas_call(
        _sim_in1_kernel,
        out_shape=(jax.ShapeDtypeStruct((B, N, N), jnp.float32),
                   jax.ShapeDtypeStruct((B, N, C), jnp.float32)),
        grid=(B,),
        in_specs=[pl.BlockSpec((None, N, C), lambda b: (b, 0, 0))]
                 + [_const_spec(p) for p in in1],
        out_specs=(pl.BlockSpec((None, N, N), lambda b: (b, 0, 0)),
                   pl.BlockSpec((None, N, C), lambda b: (b, 0, 0))),
        compiler_params=_CPARAMS,
    )(x, *in1)

    # ---- glue: top-k neighbour selection -> (B, N, k) int32 indices ----
    # TODO(synk): top-k index selection (sorting) has no clean Pallas TPU
    # equivalent; done with jax.lax.top_k between kernels. Only the small
    # index tensor (not a dense (B,N,N) mask) goes back through HBM.
    graph = jax.lax.top_k(sim, k)[1].astype(jnp.int32)     # (B, N, k)

    # ---- stage 2: per-image neighbour aggregation + multi_head_fc ----
    y = pl.pallas_call(
        functools.partial(_agg_fc_kernel, k=k),
        out_shape=jax.ShapeDtypeStruct((B, N, C), jnp.float32),
        grid=(B,),
        in_specs=[pl.BlockSpec((None, N, C), lambda b: (b, 0, 0)),
                  pl.BlockSpec((None, N, k), lambda b: (b, 0, 0))]
                 + [_const_spec(p) for p in fc],
        out_specs=pl.BlockSpec((None, N, C), lambda b: (b, 0, 0)),
        compiler_params=_CPARAMS,
    )(x1, graph, *fc)

    # ---- stage 3: batch-fused, row-tiled MLP tail ----
    tm = _row_tile(R)
    out = pl.pallas_call(
        _tail_kernel,
        out_shape=jax.ShapeDtypeStruct((R, C), jnp.float32),
        grid=(R // tm,),
        in_specs=[pl.BlockSpec((tm, C), lambda r: (r, 0)),
                  pl.BlockSpec((tm, C), lambda r: (r, 0))]
                 + [_const_spec(p) for p in tail],
        out_specs=pl.BlockSpec((tm, C), lambda r: (r, 0)),
        compiler_params=_CPARAMS,
    )(y.reshape(R, C), x.reshape(R, C), *tail)
    return out.reshape(B, N, C)


def init_params(key, C):
    """Deterministic synthetic parameters matching the PyTorch module's shapes,
    with eval-mode BatchNorm folded into the first Linear and weights in bf16."""
    keys = jax.random.split(key, 5)

    def linear_t(k, fin, fout):
        kw, kb = jax.random.split(k)
        w = jax.random.normal(kw, (fin, fout), jnp.float32) / jnp.sqrt(fin)
        b = 0.02 * jax.random.normal(kb, (1, fout), jnp.float32)
        return w, b

    def two_layer(k, fin, fhid):
        k1, k2, k3 = jax.random.split(k, 3)
        w1, b1 = linear_t(k1, fin, fhid)
        # eval-mode BatchNorm1d folded into (w1, b1)
        kg, kb = jax.random.split(k2)
        gamma = 1.0 + 0.1 * jax.random.normal(kg, (1, fhid), jnp.float32)
        beta = 0.1 * jax.random.normal(kb, (1, fhid), jnp.float32)
        running_mean = jnp.zeros((1, fhid), jnp.float32)
        running_var = jnp.ones((1, fhid), jnp.float32)
        scale = gamma / jnp.sqrt(running_var + 1e-5)
        shift = beta - running_mean * scale
        w1f = (w1 * scale).astype(jnp.bfloat16)
        b1f = b1 * scale + shift
        w2, b2 = linear_t(k3, fhid, fin)
        return (w1f, b1f, w2.astype(jnp.bfloat16), b2)

    in_layer1 = two_layer(keys[0], C, C)
    out_layer1 = two_layer(keys[1], C, C)
    in_layer2 = two_layer(keys[2], C, 4 * C)
    out_layer2 = two_layer(keys[3], C, 4 * C)

    kfc_w, kfc_b = jax.random.split(keys[4])
    # Conv1d(2C, C, 1) weight (C_out, 2C); even/odd input-channel split matches
    # the interleaved stack([x, agg], -1).view(B*N, 2C, 1) flattening.
    w_fc = jax.random.normal(kfc_w, (C, 2 * C), jnp.float32) / jnp.sqrt(2 * C)
    fc_we = jnp.transpose(w_fc[:, 0::2]).astype(jnp.bfloat16)   # (C, C) on x1
    fc_wo = jnp.transpose(w_fc[:, 1::2]).astype(jnp.bfloat16)   # (C, C) on agg
    fc_b = 0.02 * jax.random.normal(kfc_b, (1, C), jnp.float32)

    return {"in_layer1": in_layer1,
            "fc": (fc_we, fc_wo, fc_b),
            "out_layer1": out_layer1,
            "in_layer2": in_layer2,
            "out_layer2": out_layer2}


if __name__ == "__main__":
    B, N, C = 2, 16, 16
    num_edges = 9

    key = jax.random.PRNGKey(0)
    k_x, k_p = jax.random.split(key)
    x = jax.random.normal(k_x, (B, N, C), jnp.float32)
    params = init_params(k_p, C)

    fwd = jax.jit(functools.partial(vig_block, k=num_edges))
    out = jax.block_until_ready(fwd(x, params))

    assert out.shape == (B, N, C)
    assert bool(jnp.all(jnp.isfinite(out)))
    print("KERNEL_OK")
</pallas_src>

<mosaic_0001>
module attributes {stable_mosaic.version = 11 : i64} {
  func.func @_sim_in1_kernel(%arg0: i32, %arg1: memref<1x16x16xf32, #tpu.memory_space<vmem>>, %arg2: memref<16x16xbf16, #tpu.memory_space<vmem>>, %arg3: memref<1x16xf32, #tpu.memory_space<vmem>>, %arg4: memref<16x16xbf16, #tpu.memory_space<vmem>>, %arg5: memref<1x16xf32, #tpu.memory_space<vmem>>, %arg6: memref<1x16x16xf32, #tpu.memory_space<vmem>>, %arg7: memref<1x16x16xf32, #tpu.memory_space<vmem>>) attributes {dimension_semantics = [#tpu.dimension_semantics<parallel>], iteration_bounds = array<i64: 2>, scalar_prefetch = 0 : i64, scratch_operands = 0 : i64, tpu.core_type = #tpu.core_type<tc>, window_params = [{transform_indices = @transform_0, window_bounds = array<i64: 1, 16, 16>}, {pipeline_mode = #tpu.pipeline_mode<synchronous>, transform_indices = @transform_1, window_bounds = array<i64: 16, 16>}, {pipeline_mode = #tpu.pipeline_mode<synchronous>, transform_indices = @transform_2, window_bounds = array<i64: 1, 16>}, {pipeline_mode = #tpu.pipeline_mode<synchronous>, transform_indices = @transform_3, window_bounds = array<i64: 16, 16>}, {pipeline_mode = #tpu.pipeline_mode<synchronous>, transform_indices = @transform_4, window_bounds = array<i64: 1, 16>}, {transform_indices = @transform_5, window_bounds = array<i64: 1, 16, 16>}, {transform_indices = @transform_6, window_bounds = array<i64: 1, 16, 16>}]} {
    %c0 = arith.constant 0 : index
    %c0_0 = arith.constant 0 : index
    %c0_1 = arith.constant 0 : index
    %0 = vector.load %arg1[%c0, %c0_0, %c0_1] : memref<1x16x16xf32, #tpu.memory_space<vmem>>, vector<1x16x16xf32>
    %1 = vector.shape_cast %0 : vector<1x16x16xf32> to vector<16x16xf32>
    %cst = arith.constant dense<0.000000e+00> : vector<16x16xf32>
    %2 = tpu.matmul %1, %1, %cst {dimension_numbers = #tpu.dot_dimension_numbers<[1], [1], [0], [0], [0, 0, 1, 0], [], []>} : vector<16x16xf32>, vector<16x16xf32>, vector<16x16xf32> -> vector<16x16xf32>
    %c0_2 = arith.constant 0 : index
    %c0_3 = arith.constant 0 : index
    %c0_4 = arith.constant 0 : index
    %3 = vector.load %arg6[%c0_2, %c0_3, %c0_4] : memref<1x16x16xf32, #tpu.memory_space<vmem>>, vector<1x16x16xf32>
    %4 = vector.shape_cast %3 : vector<1x16x16xf32> to vector<16x16xf32>
    %5 = vector.shape_cast %2 : vector<16x16xf32> to vector<1x16x16xf32>
    tpu.vector_store %arg6[%c0_2, %c0_3, %c0_4], %5 {strides = array<i32>} : memref<1x16x16xf32, #tpu.memory_space<vmem>>, vector<1x16x16xf32>,
    %c0_5 = arith.constant 0 : index
    %c0_6 = arith.constant 0 : index
    %6 = vector.load %arg2[%c0_5, %c0_6] : memref<16x16xbf16, #tpu.memory_space<vmem>>, vector<16x16xbf16>
    %c0_7 = arith.constant 0 : index
    %c0_8 = arith.constant 0 : index
    %7 = vector.load %arg3[%c0_7, %c0_8] : memref<1x16xf32, #tpu.memory_space<vmem>>, vector<1x16xf32>
    %c0_9 = arith.constant 0 : index
    %c0_10 = arith.constant 0 : index
    %8 = vector.load %arg4[%c0_9, %c0_10] : memref<16x16xbf16, #tpu.memory_space<vmem>>, vector<16x16xbf16>
    %c0_11 = arith.constant 0 : index
    %c0_12 = arith.constant 0 : index
    %9 = vector.load %arg5[%c0_11, %c0_12] : memref<1x16xf32, #tpu.memory_space<vmem>>, vector<1x16xf32>
    %10 = arith.truncf %1 : vector<16x16xf32> to vector<16x16xbf16>
    %cst_13 = arith.constant dense<0.000000e+00> : vector<16x16xf32>
    %11 = tpu.matmul %10, %6, %cst_13 {dimension_numbers = #tpu.dot_dimension_numbers<[1], [0], [0], [1], [0, 0, 1, 1], [], []>} : vector<16x16xbf16>, vector<16x16xbf16>, vector<16x16xf32> -> vector<16x16xf32>
    %12 = vector.broadcast %7 : vector<1x16xf32> to vector<16x16xf32>
    %13 = arith.addf %11, %12 : vector<16x16xf32>
    %cst_14 = arith.constant 5.000000e-01 : f32
    %14 = vector.broadcast %cst_14 : f32 to vector<16x16xf32>
    %15 = arith.mulf %14, %13 : vector<16x16xf32>
    %cst_15 = arith.constant 0.707106769 : f32
    %16 = vector.broadcast %cst_15 : f32 to vector<16x16xf32>
    %17 = arith.mulf %13, %16 : vector<16x16xf32>
    %18 = math.erf %17 : vector<16x16xf32>
    %cst_16 = arith.constant 1.000000e+00 : f32
    %19 = vector.broadcast %cst_16 : f32 to vector<16x16xf32>
    %20 = arith.addf %19, %18 : vector<16x16xf32>
    %21 = arith.mulf %15, %20 : vector<16x16xf32>
    %22 = arith.truncf %21 : vector<16x16xf32> to vector<16x16xbf16>
    %cst_17 = arith.constant dense<0.000000e+00> : vector<16x16xf32>
    %23 = tpu.matmul %22, %8, %cst_17 {dimension_numbers = #tpu.dot_dimension_numbers<[1], [0], [0], [1], [0, 0, 1, 1], [], []>} : vector<16x16xbf16>, vector<16x16xbf16>, vector<16x16xf32> -> vector<16x16xf32>
    %24 = vector.broadcast %9 : vector<1x16xf32> to vector<16x16xf32>
    %25 = arith.addf %23, %24 : vector<16x16xf32>
    %26 = arith.addf %25, %1 : vector<16x16xf32>
    %c0_18 = arith.constant 0 : index
    %c0_19 = arith.constant 0 : index
    %c0_20 = arith.constant 0 : index
    %27 = vector.load %arg7[%c0_18, %c0_19, %c0_20] : memref<1x16x16xf32, #tpu.memory_space<vmem>>, vector<1x16x16xf32>
    %28 = vector.shape_cast %27 : vector<1x16x16xf32> to vector<16x16xf32>
    %29 = vector.shape_cast %26 : vector<16x16xf32> to vector<1x16x16xf32>
    tpu.vector_store %arg7[%c0_18, %c0_19, %c0_20], %29 {strides = array<i32>} : memref<1x16x16xf32, #tpu.memory_space<vmem>>, vector<1x16x16xf32>,
    return
  }
  func.func @transform_0(%arg0: i32) -> (i32, i32, i32) {
    %c0_i32 = arith.constant 0 : i32
    %c0_i32_0 = arith.constant 0 : i32
    %c0_i32_1 = arith.constant 0 : i32
    return %arg0, %c0_i32, %c0_i32_0 : i32, i32, i32
  }
  func.func @transform_1(%arg0: i32) -> (i32, i32) {
    %c0_i32 = arith.constant 0 : i32
    %c0_i32_0 = arith.constant 0 : i32
    %c0_i32_1 = arith.constant 0 : i32
    return %c0_i32, %c0_i32_0 : i32, i32
  }
  func.func @transform_2(%arg0: i32) -> (i32, i32) {
    %c0_i32 = arith.constant 0 : i32
    %c0_i32_0 = arith.constant 0 : i32
    %c0_i32_1 = arith.constant 0 : i32
    return %c0_i32, %c0_i32_0 : i32, i32
  }
  func.func @transform_3(%arg0: i32) -> (i32, i32) {
    %c0_i32 = arith.constant 0 : i32
    %c0_i32_0 = arith.constant 0 : i32
    %c0_i32_1 = arith.constant 0 : i32
    return %c0_i32, %c0_i32_0 : i32, i32
  }
  func.func @transform_4(%arg0: i32) -> (i32, i32) {
    %c0_i32 = arith.constant 0 : i32
    %c0_i32_0 = arith.constant 0 : i32
    %c0_i32_1 = arith.constant 0 : i32
    return %c0_i32, %c0_i32_0 : i32, i32
  }
  func.func @transform_5(%arg0: i32) -> (i32, i32, i32) {
    %c0_i32 = arith.constant 0 : i32
    %c0_i32_0 = arith.constant 0 : i32
    %c0_i32_1 = arith.constant 0 : i32
    return %arg0, %c0_i32, %c0_i32_0 : i32, i32, i32
  }
  func.func @transform_6(%arg0: i32) -> (i32, i32, i32) {
    %c0_i32 = arith.constant 0 : i32
    %c0_i32_0 = arith.constant 0 : i32
    %c0_i32_1 = arith.constant 0 : i32
    return %arg0, %c0_i32, %c0_i32_0 : i32, i32, i32
  }
}

module attributes {stable_mosaic.version = 11 : i64} {
  func.func @_tail_kernel(%arg0: i32, %arg1: memref<16x16xf32, #tpu.memory_space<vmem>>, %arg2: memref<16x16xf32, #tpu.memory_space<vmem>>, %arg3: memref<16x16xbf16, #tpu.memory_space<vmem>>, %arg4: memref<1x16xf32, #tpu.memory_space<vmem>>, %arg5: memref<16x16xbf16, #tpu.memory_space<vmem>>, %arg6: memref<1x16xf32, #tpu.memory_space<vmem>>, %arg7: memref<16x64xbf16, #tpu.memory_space<vmem>>, %arg8: memref<1x64xf32, #tpu.memory_space<vmem>>, %arg9: memref<64x16xbf16, #tpu.memory_space<vmem>>, %arg10: memref<1x16xf32, #tpu.memory_space<vmem>>, %arg11: memref<16x64xbf16, #tpu.memory_space<vmem>>, %arg12: memref<1x64xf32, #tpu.memory_space<vmem>>, %arg13: memref<64x16xbf16, #tpu.memory_space<vmem>>, %arg14: memref<1x16xf32, #tpu.memory_space<vmem>>, %arg15: memref<16x16xf32, #tpu.memory_space<vmem>>) attributes {dimension_semantics = [#tpu.dimension_semantics<parallel>], iteration_bounds = array<i64: 2>, scalar_prefetch = 0 : i64, scratch_operands = 0 : i64, tpu.core_type = #tpu.core_type<tc>, window_params = [{transform_indices = @transform_0, window_bounds = array<i64: 16, 16>}, {transform_indices = @transform_1, window_bounds = array<i64: 16, 16>}, {pipeline_mode = #tpu.pipeline_mode<synchronous>, transform_indices = @transform_2, window_bounds = array<i64: 16, 16>}, {pipeline_mode = #tpu.pipeline_mode<synchronous>, transform_indices = @transform_3, window_bounds = array<i64: 1, 16>}, {pipeline_mode = #tpu.pipeline_mode<synchronous>, transform_indices = @transform_4, window_bounds = array<i64: 16, 16>}, {pipeline_mode = #tpu.pipeline_mode<synchronous>, transform_indices = @transform_5, window_bounds = array<i64: 1, 16>}, {pipeline_mode = #tpu.pipeline_mode<synchronous>, transform_indices = @transform_6, window_bounds = array<i64: 16, 64>}, {pipeline_mode = #tpu.pipeline_mode<synchronous>, transform_indices = @transform_7, window_bounds = array<i64: 1, 64>}, {pipeline_mode = #tpu.pipeline_mode<synchronous>, transform_indices = @transform_8, window_bounds = array<i64: 64, 16>}, {pipeline_mode = #tpu.pipeline_mode<synchronous>, transform_indices = @transform_9, window_bounds = array<i64: 1, 16>}, {pipeline_mode = #tpu.pipeline_mode<synchronous>, transform_indices = @transform_10, window_bounds = array<i64: 16, 64>}, {pipeline_mode = #tpu.pipeline_mode<synchronous>, transform_indices = @transform_11, window_bounds = array<i64: 1, 64>}, {pipeline_mode = #tpu.pipeline_mode<synchronous>, transform_indices = @transform_12, window_bounds = array<i64: 64, 16>}, {pipeline_mode = #tpu.pipeline_mode<synchronous>, transform_indices = @transform_13, window_bounds = array<i64: 1, 16>}, {transform_indices = @transform_14, window_bounds = array<i64: 16, 16>}]} {
    %c0 = arith.constant 0 : index
    %c0_0 = arith.constant 0 : index
    %0 = vector.load %arg2[%c0, %c0_0] : memref<16x16xf32, #tpu.memory_space<vmem>>, vector<16x16xf32>
    %c0_1 = arith.constant 0 : index
    %c0_2 = arith.constant 0 : index
    %1 = vector.load %arg1[%c0_1, %c0_2] : memref<16x16xf32, #tpu.memory_space<vmem>>, vector<16x16xf32>
    %cst = arith.constant 5.000000e-01 : f32
    %2 = vector.broadcast %cst : f32 to vector<16x16xf32>
    %3 = arith.mulf %2, %1 : vector<16x16xf32>
    %cst_3 = arith.constant 0.707106769 : f32
    %4 = vector.broadcast %cst_3 : f32 to vector<16x16xf32>
    %5 = arith.mulf %1, %4 : vector<16x16xf32>
    %6 = math.erf %5 : vector<16x16xf32>
    %cst_4 = arith.constant 1.000000e+00 : f32
    %7 = vector.broadcast %cst_4 : f32 to vector<16x16xf32>
    %8 = arith.addf %7, %6 : vector<16x16xf32>
    %9 = arith.mulf %3, %8 : vector<16x16xf32>
    %c0_5 = arith.constant 0 : index
    %c0_6 = arith.constant 0 : index
    %10 = vector.load %arg3[%c0_5, %c0_6] : memref<16x16xbf16, #tpu.memory_space<vmem>>, vector<16x16xbf16>
    %c0_7 = arith.constant 0 : index
    %c0_8 = arith.constant 0 : index
    %11 = vector.load %arg4[%c0_7, %c0_8] : memref<1x16xf32, #tpu.memory_space<vmem>>, vector<1x16xf32>
    %c0_9 = arith.constant 0 : index
    %c0_10 = arith.constant 0 : index
    %12 = vector.load %arg5[%c0_9, %c0_10] : memref<16x16xbf16, #tpu.memory_space<vmem>>, vector<16x16xbf16>
    %c0_11 = arith.constant 0 : index
    %c0_12 = arith.constant 0 : index
    %13 = vector.load %arg6[%c0_11, %c0_12] : memref<1x16xf32, #tpu.memory_space<vmem>>, vector<1x16xf32>
    %14 = arith.truncf %9 : vector<16x16xf32> to vector<16x16xbf16>
    %cst_13 = arith.constant dense<0.000000e+00> : vector<16x16xf32>
    %15 = tpu.matmul %14, %10, %cst_13 {dimension_numbers = #tpu.dot_dimension_numbers<[1], [0], [0], [1], [0, 0, 1, 1], [], []>} : vector<16x16xbf16>, vector<16x16xbf16>, vector<16x16xf32> -> vector<16x16xf32>
    %16 = vector.broadcast %11 : vector<1x16xf32> to vector<16x16xf32>
    %17 = arith.addf %15, %16 : vector<16x16xf32>
    %cst_14 = arith.constant 5.000000e-01 : f32
    %18 = vector.broadcast %cst_14 : f32 to vector<16x16xf32>
    %19 = arith.mulf %18, %17 : vector<16x16xf32>
    %cst_15 = arith.constant 0.707106769 : f32
    %20 = vector.broadcast %cst_15 : f32 to vector<16x16xf32>
    %21 = arith.mulf %17, %20 : vector<16x16xf32>
    %22 = math.erf %21 : vector<16x16xf32>
    %cst_16 = arith.constant 1.000000e+00 : f32
    %23 = vector.broadcast %cst_16 : f32 to vector<16x16xf32>
    %24 = arith.addf %23, %22 : vector<16x16xf32>
    %25 = arith.mulf %19, %24 : vector<16x16xf32>
    %26 = arith.truncf %25 : vector<16x16xf32> to vector<16x16xbf16>
    %cst_17 = arith.constant dense<0.000000e+00> : vector<16x16xf32>
    %27 = tpu.matmul %26, %12, %cst_17 {dimension_numbers = #tpu.dot_dimension_numbers<[1], [0], [0], [1], [0, 0, 1, 1], [], []>} : vector<16x16xbf16>, vector<16x16xbf16>, vector<16x16xf32> -> vector<16x16xf32>
    %28 = vector.broadcast %13 : vector<1x16xf32> to vector<16x16xf32>
    %29 = arith.addf %27, %28 : vector<16x16xf32>
    %30 = arith.addf %29, %9 : vector<16x16xf32>
    %31 = arith.addf %30, %0 : vector<16x16xf32>
    %c0_18 = arith.constant 0 : index
    %c0_19 = arith.constant 0 : index
    %32 = vector.load %arg7[%c0_18, %c0_19] : memref<16x64xbf16, #tpu.memory_space<vmem>>, vector<16x64xbf16>
    %c0_20 = arith.constant 0 : index
    %c0_21 = arith.constant 0 : index
    %33 = vector.load %arg8[%c0_20, %c0_21] : memref<1x64xf32, #tpu.memory_space<vmem>>, vector<1x64xf32>
    %c0_22 = arith.constant 0 : index
    %c0_23 = arith.constant 0 : index
    %34 = vector.load %arg9[%c0_22, %c0_23] : memref<64x16xbf16, #tpu.memory_space<vmem>>, vector<64x16xbf16>
    %c0_24 = arith.constant 0 : index
    %c0_25 = arith.constant 0 : index
    %35 = vector.load %arg10[%c0_24, %c0_25] : memref<1x16xf32, #tpu.memory_space<vmem>>, vector<1x16xf32>
    %36 = arith.truncf %31 : vector<16x16xf32> to vector<16x16xbf16>
    %cst_26 = arith.constant dense<0.000000e+00> : vector<16x64xf32>
    %37 = tpu.matmul %36, %32, %cst_26 {dimension_numbers = #tpu.dot_dimension_numbers<[1], [0], [0], [1], [0, 0, 1, 1], [], []>} : vector<16x16xbf16>, vector<16x64xbf16>, vector<16x64xf32> -> vector<16x64xf32>
    %38 = vector.broadcast %33 : vector<1x64xf32> to vector<16x64xf32>
    %39 = arith.addf %37, %38 : vector<16x64xf32>
    %cst_27 = arith.constant 5.000000e-01 : f32
    %40 = vector.broadcast %cst_27 : f32 to vector<16x64xf32>
    %41 = arith.mulf %40, %39 : vector<16x64xf32>
    %cst_28 = arith.constant 0.707106769 : f32
    %42 = vector.broadcast %cst_28 : f32 to vector<16x64xf32>
    %43 = arith.mulf %39, %42 : vector<16x64xf32>
    %44 = math.erf %43 : vector<16x64xf32>
    %cst_29 = arith.constant 1.000000e+00 : f32
    %45 = vector.broadcast %cst_29 : f32 to vector<16x64xf32>
    %46 = arith.addf %45, %44 : vector<16x64xf32>
    %47 = arith.mulf %41, %46 : vector<16x64xf32>
    %48 = arith.truncf %47 : vector<16x64xf32> to vector<16x64xbf16>
    %cst_30 = arith.constant dense<0.000000e+00> : vector<16x16xf32>
    %49 = tpu.matmul %48, %34, %cst_30 {dimension_numbers = #tpu.dot_dimension_numbers<[1], [0], [0], [1], [0, 0, 1, 1], [], []>} : vector<16x64xbf16>, vector<64x16xbf16>, vector<16x16xf32> -> vector<16x16xf32>
    %50 = vector.broadcast %35 : vector<1x16xf32> to vector<16x16xf32>
    %51 = arith.addf %49, %50 : vector<16x16xf32>
    %52 = arith.addf %51, %31 : vector<16x16xf32>
    %cst_31 = arith.constant 5.000000e-01 : f32
    %53 = vector.broadcast %cst_31 : f32 to vector<16x16xf32>
    %54 = arith.mulf %53, %52 : vector<16x16xf32>
    %cst_32 = arith.constant 0.707106769 : f32
    %55 = vector.broadcast %cst_32 : f32 to vector<16x16xf32>
    %56 = arith.mulf %52, %55 : vector<16x16xf32>
    %57 = math.erf %56 : vector<16x16xf32>
    %cst_33 = arith.constant 1.000000e+00 : f32
    %58 = vector.broadcast %cst_33 : f32 to vector<16x16xf32>
    %59 = arith.addf %58, %57 : vector<16x16xf32>
    %60 = arith.mulf %54, %59 : vector<16x16xf32>
    %c0_34 = arith.constant 0 : index
    %c0_35 = arith.constant 0 : index
    %61 = vector.load %arg11[%c0_34, %c0_35] : memref<16x64xbf16, #tpu.memory_space<vmem>>, vector<16x64xbf16>
    %c0_36 = arith.constant 0 : index
    %c0_37 = arith.constant 0 : index
    %62 = vector.load %arg12[%c0_36, %c0_37] : memref<1x64xf32, #tpu.memory_space<vmem>>, vector<1x64xf32>
    %c0_38 = arith.constant 0 : index
    %c0_39 = arith.constant 0 : index
    %63 = vector.load %arg13[%c0_38, %c0_39] : memref<64x16xbf16, #tpu.memory_space<vmem>>, vector<64x16xbf16>
    %c0_40 = arith.constant 0 : index
    %c0_41 = arith.constant 0 : index
    %64 = vector.load %arg14[%c0_40, %c0_41] : memref<1x16xf32, #tpu.memory_space<vmem>>, vector<1x16xf32>
    %65 = arith.truncf %60 : vector<16x16xf32> to vector<16x16xbf16>
    %cst_42 = arith.constant dense<0.000000e+00> : vector<16x64xf32>
    %66 = tpu.matmul %65, %61, %cst_42 {dimension_numbers = #tpu.dot_dimension_numbers<[1], [0], [0], [1], [0, 0, 1, 1], [], []>} : vector<16x16xbf16>, vector<16x64xbf16>, vector<16x64xf32> -> vector<16x64xf32>
    %67 = vector.broadcast %62 : vector<1x64xf32> to vector<16x64xf32>
    %68 = arith.addf %66, %67 : vector<16x64xf32>
    %cst_43 = arith.constant 5.000000e-01 : f32
    %69 = vector.broadcast %cst_43 : f32 to vector<16x64xf32>
    %70 = arith.mulf %69, %68 : vector<16x64xf32>
    %cst_44 = arith.constant 0.707106769 : f32
    %71 = vector.broadcast %cst_44 : f32 to vector<16x64xf32>
    %72 = arith.mulf %68, %71 : vector<16x64xf32>
    %73 = math.erf %72 : vector<16x64xf32>
    %cst_45 = arith.constant 1.000000e+00 : f32
    %74 = vector.broadcast %cst_45 : f32 to vector<16x64xf32>
    %75 = arith.addf %74, %73 : vector<16x64xf32>
    %76 = arith.mulf %70, %75 : vector<16x64xf32>
    %77 = arith.truncf %76 : vector<16x64xf32> to vector<16x64xbf16>
    %cst_46 = arith.constant dense<0.000000e+00> : vector<16x16xf32>
    %78 = tpu.matmul %77, %63, %cst_46 {dimension_numbers = #tpu.dot_dimension_numbers<[1], [0], [0], [1], [0, 0, 1, 1], [], []>} : vector<16x64xbf16>, vector<64x16xbf16>, vector<16x16xf32> -> vector<16x16xf32>
    %79 = vector.broadcast %64 : vector<1x16xf32> to vector<16x16xf32>
    %80 = arith.addf %78, %79 : vector<16x16xf32>
    %81 = arith.addf %80, %60 : vector<16x16xf32>
    %82 = arith.addf %81, %31 : vector<16x16xf32>
    %c0_47 = arith.constant 0 : index
    %c0_48 = arith.constant 0 : index
    %83 = vector.load %arg15[%c0_47, %c0_48] : memref<16x16xf32, #tpu.memory_space<vmem>>, vector<16x16xf32>
    tpu.vector_store %arg15[%c0_47, %c0_48], %82 {strides = array<i32>} : memref<16x16xf32, #tpu.memory_space<vmem>>, vector<16x16xf32>,
    return
  }
  func.func @transform_0(%arg0: i32) -> (i32, i32) {
    %c0_i32 = arith.constant 0 : i32
    %c0_i32_0 = arith.constant 0 : i32
    return %arg0, %c0_i32 : i32, i32
  }
  func.func @transform_1(%arg0: i32) -> (i32, i32) {
    %c0_i32 = arith.constant 0 : i32
    %c0_i32_0 = arith.constant 0 : i32
    return %arg0, %c0_i32 : i32, i32
  }
  func.func @transform_2(%arg0: i32) -> (i32, i32) {
    %c0_i32 = arith.constant 0 : i32
    %c0_i32_0 = arith.constant 0 : i32
    %c0_i32_1 = arith.constant 0 : i32
    return %c0_i32, %c0_i32_0 : i32, i32
  }
  func.func @transform_3(%arg0: i32) -> (i32, i32) {
    %c0_i32 = arith.constant 0 : i32
    %c0_i32_0 = arith.constant 0 : i32
    %c0_i32_1 = arith.constant 0 : i32
    return %c0_i32, %c0_i32_0 : i32, i32
  }
  func.func @transform_4(%arg0: i32) -> (i32, i32) {
    %c0_i32 = arith.constant 0 : i32
    %c0_i32_0 = arith.constant 0 : i32
    %c0_i32_1 = arith.constant 0 : i32
    return %c0_i32, %c0_i32_0 : i32, i32
  }
  func.func @transform_5(%arg0: i32) -> (i32, i32) {
    %c0_i32 = arith.constant 0 : i32
    %c0_i32_0 = arith.constant 0 : i32
    %c0_i32_1 = arith.constant 0 : i32
    return %c0_i32, %c0_i32_0 : i32, i32
  }
  func.func @transform_6(%arg0: i32) -> (i32, i32) {
    %c0_i32 = arith.constant 0 : i32
    %c0_i32_0 = arith.constant 0 : i32
    %c0_i32_1 = arith.constant 0 : i32
    return %c0_i32, %c0_i32_0 : i32, i32
  }
  func.func @transform_7(%arg0: i32) -> (i32, i32) {
    %c0_i32 = arith.constant 0 : i32
    %c0_i32_0 = arith.constant 0 : i32
    %c0_i32_1 = arith.constant 0 : i32
    return %c0_i32, %c0_i32_0 : i32, i32
  }
  func.func @transform_8(%arg0: i32) -> (i32, i32) {
    %c0_i32 = arith.constant 0 : i32
    %c0_i32_0 = arith.constant 0 : i32
    %c0_i32_1 = arith.constant 0 : i32
    return %c0_i32, %c0_i32_0 : i32, i32
  }
  func.func @transform_9(%arg0: i32) -> (i32, i32) {
    %c0_i32 = arith.constant 0 : i32
    %c0_i32_0 = arith.constant 0 : i32
    %c0_i32_1 = arith.constant 0 : i32
    return %c0_i32, %c0_i32_0 : i32, i32
  }
  func.func @transform_10(%arg0: i32) -> (i32, i32) {
    %c0_i32 = arith.constant 0 : i32
    %c0_i32_0 = arith.constant 0 : i32
    %c0_i32_1 = arith.constant 0 : i32
    return %c0_i32, %c0_i32_0 : i32, i32
  }
  func.func @transform_11(%arg0: i32) -> (i32, i32) {
    %c0_i32 = arith.constant 0 : i32
    %c0_i32_0 = arith.constant 0 : i32
    %c0_i32_1 = arith.constant 0 : i32
    return %c0_i32, %c0_i32_0 : i32, i32
  }
  func.func @transform_12(%arg0: i32) -> (i32, i32) {
    %c0_i32 = arith.constant 0 : i32
    %c0_i32_0 = arith.constant 0 : i32
    %c0_i32_1 = arith.constant 0 : i32
    return %c0_i32, %c0_i32_0 : i32, i32
  }
  func.func @transform_13(%arg0: i32) -> (i32, i32) {
    %c0_i32 = arith.constant 0 : i32
    %c0_i32_0 = arith.constant 0 : i32
    %c0_i32_1 = arith.constant 0 : i32
    return %c0_i32, %c0_i32_0 : i32, i32
  }
  func.func @transform_14(%arg0: i32) -> (i32, i32) {
    %c0_i32 = arith.constant 0 : i32
    %c0_i32_0 = arith.constant 0 : i32
    return %arg0, %c0_i32 : i32, i32
  }
}

module attributes {stable_mosaic.version = 11 : i64} {
  func.func @_agg_fc_kernel(%arg0: i32, %arg1: memref<1x16x16xf32, #tpu.memory_space<vmem>>, %arg2: memref<1x16x9xi32, #tpu.memory_space<vmem>>, %arg3: memref<16x16xbf16, #tpu.memory_space<vmem>>, %arg4: memref<16x16xbf16, #tpu.memory_space<vmem>>, %arg5: memref<1x16xf32, #tpu.memory_space<vmem>>, %arg6: memref<1x16x16xf32, #tpu.memory_space<vmem>>) attributes {dimension_semantics = [#tpu.dimension_semantics<parallel>], iteration_bounds = array<i64: 2>, scalar_prefetch = 0 : i64, scratch_operands = 0 : i64, tpu.core_type = #tpu.core_type<tc>, window_params = [{transform_indices = @transform_0, window_bounds = array<i64: 1, 16, 16>}, {transform_indices = @transform_1, window_bounds = array<i64: 1, 16, 9>}, {pipeline_mode = #tpu.pipeline_mode<synchronous>, transform_indices = @transform_2, window_bounds = array<i64: 16, 16>}, {pipeline_mode = #tpu.pipeline_mode<synchronous>, transform_indices = @transform_3, window_bounds = array<i64: 16, 16>}, {pipeline_mode = #tpu.pipeline_mode<synchronous>, transform_indices = @transform_4, window_bounds = array<i64: 1, 16>}, {transform_indices = @transform_5, window_bounds = array<i64: 1, 16, 16>}]} {
    %c0 = arith.constant 0 : index
    %c0_0 = arith.constant 0 : index
    %c0_1 = arith.constant 0 : index
    %0 = vector.load %arg1[%c0, %c0_0, %c0_1] : memref<1x16x16xf32, #tpu.memory_space<vmem>>, vector<1x16x16xf32>
    %1 = vector.shape_cast %0 : vector<1x16x16xf32> to vector<16x16xf32>
    %c0_2 = arith.constant 0 : index
    %c0_3 = arith.constant 0 : index
    %c0_4 = arith.constant 0 : index
    %2 = vector.load %arg2[%c0_2, %c0_3, %c0_4] : memref<1x16x9xi32, #tpu.memory_space<vmem>>, vector<1x16x9xi32>
    %3 = vector.shape_cast %2 : vector<1x16x9xi32> to vector<16x9xi32>
    %4 = tpu.iota {dimensions = array<i32: 1>} : vector<16x16xi32>
    %5 = vector.extract_strided_slice %3 {offsets = [0, 0], sizes = [16, 1], strides = [1, 1]} : vector<16x9xi32> to vector<16x1xi32>
    %6 = vector.broadcast %5 : vector<16x1xi32> to vector<16x16xi32>
    %7 = arith.cmpi eq, %4, %6 : vector<16x16xi32>
    %8 = arith.extui %7 : vector<16x16xi1> to vector<16x16xi32>
    %9 = arith.sitofp %8 : vector<16x16xi32> to vector<16x16xf32>
    %cst = arith.constant dense<0.000000e+00> : vector<16x16xf32>
    %10 = tpu.matmul %9, %1, %cst {dimension_numbers = #tpu.dot_dimension_numbers<[1], [0], [0], [1], [0, 0, 1, 1], [], []>} : vector<16x16xf32>, vector<16x16xf32>, vector<16x16xf32> -> vector<16x16xf32>
    %11 = vector.extract_strided_slice %3 {offsets = [0, 1], sizes = [16, 1], strides = [1, 1]} : vector<16x9xi32> to vector<16x1xi32>
    %12 = vector.broadcast %11 : vector<16x1xi32> to vector<16x16xi32>
    %13 = arith.cmpi eq, %4, %12 : vector<16x16xi32>
    %14 = arith.extui %13 : vector<16x16xi1> to vector<16x16xi32>
    %15 = arith.sitofp %14 : vector<16x16xi32> to vector<16x16xf32>
    %cst_5 = arith.constant dense<0.000000e+00> : vector<16x16xf32>
    %16 = tpu.matmul %15, %1, %cst_5 {dimension_numbers = #tpu.dot_dimension_numbers<[1], [0], [0], [1], [0, 0, 1, 1], [], []>} : vector<16x16xf32>, vector<16x16xf32>, vector<16x16xf32> -> vector<16x16xf32>
    %17 = arith.maximumf %10, %16 : vector<16x16xf32>
    %18 = vector.extract_strided_slice %3 {offsets = [0, 2], sizes = [16, 1], strides = [1, 1]} : vector<16x9xi32> to vector<16x1xi32>
    %19 = vector.broadcast %18 : vector<16x1xi32> to vector<16x16xi32>
    %20 = arith.cmpi eq, %4, %19 : vector<16x16xi32>
    %21 = arith.extui %20 : vector<16x16xi1> to vector<16x16xi32>
    %22 = arith.sitofp %21 : vector<16x16xi32> to vector<16x16xf32>
    %cst_6 = arith.constant dense<0.000000e+00> : vector<16x16xf32>
    %23 = tpu.matmul %22, %1, %cst_6 {dimension_numbers = #tpu.dot_dimension_numbers<[1], [0], [0], [1], [0, 0, 1, 1], [], []>} : vector<16x16xf32>, vector<16x16xf32>, vector<16x16xf32> -> vector<16x16xf32>
    %24 = arith.maximumf %17, %23 : vector<16x16xf32>
    %25 = vector.extract_strided_slice %3 {offsets = [0, 3], sizes = [16, 1], strides = [1, 1]} : vector<16x9xi32> to vector<16x1xi32>
    %26 = vector.broadcast %25 : vector<16x1xi32> to vector<16x16xi32>
    %27 = arith.cmpi eq, %4, %26 : vector<16x16xi32>
    %28 = arith.extui %27 : vector<16x16xi1> to vector<16x16xi32>
    %29 = arith.sitofp %28 : vector<16x16xi32> to vector<16x16xf32>
    %cst_7 = arith.constant dense<0.000000e+00> : vector<16x16xf32>
    %30 = tpu.matmul %29, %1, %cst_7 {dimension_numbers = #tpu.dot_dimension_numbers<[1], [0], [0], [1], [0, 0, 1, 1], [], []>} : vector<16x16xf32>, vector<16x16xf32>, vector<16x16xf32> -> vector<16x16xf32>
    %31 = arith.maximumf %24, %30 : vector<16x16xf32>
    %32 = vector.extract_strided_slice %3 {offsets = [0, 4], sizes = [16, 1], strides = [1, 1]} : vector<16x9xi32> to vector<16x1xi32>
    %33 = vector.broadcast %32 : vector<16x1xi32> to vector<16x16xi32>
    %34 = arith.cmpi eq, %4, %33 : vector<16x16xi32>
    %35 = arith.extui %34 : vector<16x16xi1> to vector<16x16xi32>
    %36 = arith.sitofp %35 : vector<16x16xi32> to vector<16x16xf32>
    %cst_8 = arith.constant dense<0.000000e+00> : vector<16x16xf32>
    %37 = tpu.matmul %36, %1, %cst_8 {dimension_numbers = #tpu.dot_dimension_numbers<[1], [0], [0], [1], [0, 0, 1, 1], [], []>} : vector<16x16xf32>, vector<16x16xf32>, vector<16x16xf32> -> vector<16x16xf32>
    %38 = arith.maximumf %31, %37 : vector<16x16xf32>
    %39 = vector.extract_strided_slice %3 {offsets = [0, 5], sizes = [16, 1], strides = [1, 1]} : vector<16x9xi32> to vector<16x1xi32>
    %40 = vector.broadcast %39 : vector<16x1xi32> to vector<16x16xi32>
    %41 = arith.cmpi eq, %4, %40 : vector<16x16xi32>
    %42 = arith.extui %41 : vector<16x16xi1> to vector<16x16xi32>
    %43 = arith.sitofp %42 : vector<16x16xi32> to vector<16x16xf32>
    %cst_9 = arith.constant dense<0.000000e+00> : vector<16x16xf32>
    %44 = tpu.matmul %43, %1, %cst_9 {dimension_numbers = #tpu.dot_dimension_numbers<[1], [0], [0], [1], [0, 0, 1, 1], [], []>} : vector<16x16xf32>, vector<16x16xf32>, vector<16x16xf32> -> vector<16x16xf32>
    %45 = arith.maximumf %38, %44 : vector<16x16xf32>
    %46 = vector.extract_strided_slice %3 {offsets = [0, 6], sizes = [16, 1], strides = [1, 1]} : vector<16x9xi32> to vector<16x1xi32>
    %47 = vector.broadcast %46 : vector<16x1xi32> to vector<16x16xi32>
    %48 = arith.cmpi eq, %4, %47 : vector<16x16xi32>
    %49 = arith.extui %48 : vector<16x16xi1> to vector<16x16xi32>
    %50 = arith.sitofp %49 : vector<16x16xi32> to vector<16x16xf32>
    %cst_10 = arith.constant dense<0.000000e+00> : vector<16x16xf32>
    %51 = tpu.matmul %50, %1, %cst_10 {dimension_numbers = #tpu.dot_dimension_numbers<[1], [0], [0], [1], [0, 0, 1, 1], [], []>} : vector<16x16xf32>, vector<16x16xf32>, vector<16x16xf32> -> vector<16x16xf32>
    %52 = arith.maximumf %45, %51 : vector<16x16xf32>
    %53 = vector.extract_strided_slice %3 {offsets = [0, 7], sizes = [16, 1], strides = [1, 1]} : vector<16x9xi32> to vector<16x1xi32>
    %54 = vector.broadcast %53 : vector<16x1xi32> to vector<16x16xi32>
    %55 = arith.cmpi eq, %4, %54 : vector<16x16xi32>
    %56 = arith.extui %55 : vector<16x16xi1> to vector<16x16xi32>
    %57 = arith.sitofp %56 : vector<16x16xi32> to vector<16x16xf32>
    %cst_11 = arith.constant dense<0.000000e+00> : vector<16x16xf32>
    %58 = tpu.matmul %57, %1, %cst_11 {dimension_numbers = #tpu.dot_dimension_numbers<[1], [0], [0], [1], [0, 0, 1, 1], [], []>} : vector<16x16xf32>, vector<16x16xf32>, vector<16x16xf32> -> vector<16x16xf32>
    %59 = arith.maximumf %52, %58 : vector<16x16xf32>
    %60 = vector.extract_strided_slice %3 {offsets = [0, 8], sizes = [16, 1], strides = [1, 1]} : vector<16x9xi32> to vector<16x1xi32>
    %61 = vector.broadcast %60 : vector<16x1xi32> to vector<16x16xi32>
    %62 = arith.cmpi eq, %4, %61 : vector<16x16xi32>
    %63 = arith.extui %62 : vector<16x16xi1> to vector<16x16xi32>
    %64 = arith.sitofp %63 : vector<16x16xi32> to vector<16x16xf32>
    %cst_12 = arith.constant dense<0.000000e+00> : vector<16x16xf32>
    %65 = tpu.matmul %64, %1, %cst_12 {dimension_numbers = #tpu.dot_dimension_numbers<[1], [0], [0], [1], [0, 0, 1, 1], [], []>} : vector<16x16xf32>, vector<16x16xf32>, vector<16x16xf32> -> vector<16x16xf32>
    %66 = arith.maximumf %59, %65 : vector<16x16xf32>
    %67 = arith.subf %66, %1 : vector<16x16xf32>
    %68 = arith.truncf %1 : vector<16x16xf32> to vector<16x16xbf16>
    %c0_13 = arith.constant 0 : index
    %c0_14 = arith.constant 0 : index
    %69 = vector.load %arg3[%c0_13, %c0_14] : memref<16x16xbf16, #tpu.memory_space<vmem>>, vector<16x16xbf16>
    %cst_15 = arith.constant dense<0.000000e+00> : vector<16x16xf32>
    %70 = tpu.matmul %68, %69, %cst_15 {dimension_numbers = #tpu.dot_dimension_numbers<[1], [0], [0], [1], [0, 0, 1, 1], [], []>} : vector<16x16xbf16>, vector<16x16xbf16>, vector<16x16xf32> -> vector<16x16xf32>
    %71 = arith.truncf %67 : vector<16x16xf32> to vector<16x16xbf16>
    %c0_16 = arith.constant 0 : index
    %c0_17 = arith.constant 0 : index
    %72 = vector.load %arg4[%c0_16, %c0_17] : memref<16x16xbf16, #tpu.memory_space<vmem>>, vector<16x16xbf16>
    %cst_18 = arith.constant dense<0.000000e+00> : vector<16x16xf32>
    %73 = tpu.matmul %71, %72, %cst_18 {dimension_numbers = #tpu.dot_dimension_numbers<[1], [0], [0], [1], [0, 0, 1, 1], [], []>} : vector<16x16xbf16>, vector<16x16xbf16>, vector<16x16xf32> -> vector<16x16xf32>
    %74 = arith.addf %70, %73 : vector<16x16xf32>
    %c0_19 = arith.constant 0 : index
    %c0_20 = arith.constant 0 : index
    %75 = vector.load %arg5[%c0_19, %c0_20] : memref<1x16xf32, #tpu.memory_space<vmem>>, vector<1x16xf32>
    %76 = vector.broadcast %75 : vector<1x16xf32> to vector<16x16xf32>
    %77 = arith.addf %74, %76 : vector<16x16xf32>
    %c0_21 = arith.constant 0 : index
    %c0_22 = arith.constant 0 : index
    %c0_23 = arith.constant 0 : index
    %78 = vector.load %arg6[%c0_21, %c0_22, %c0_23] : memref<1x16x16xf32, #tpu.memory_space<vmem>>, vector<1x16x16xf32>
    %79 = vector.shape_cast %78 : vector<1x16x16xf32> to vector<16x16xf32>
    %80 = vector.shape_cast %77 : vector<16x16xf32> to vector<1x16x16xf32>
    tpu.vector_store %arg6[%c0_21, %c0_22, %c0_23], %80 {strides = array<i32>} : memref<1x16x16xf32, #tpu.memory_space<vmem>>, vector<1x16x16xf32>,
    return
  }
  func.func @transform_0(%arg0: i32) -> (i32, i32, i32) {
    %c0_i32 = arith.constant 0 : i32
    %c0_i32_0 = arith.constant 0 : i32
    %c0_i32_1 = arith.constant 0 : i32
    return %arg0, %c0_i32, %c0_i32_0 : i32, i32, i32
  }
  func.func @transform_1(%arg0: i32) -> (i32, i32, i32) {
    %c0_i32 = arith.constant 0 : i32
    %c0_i32_0 = arith.constant 0 : i32
    %c0_i32_1 = arith.constant 0 : i32
    return %arg0, %c0_i32, %c0_i32_0 : i32, i32, i32
  }
  func.func @transform_2(%arg0: i32) -> (i32, i32) {
    %c0_i32 = arith.constant 0 : i32
    %c0_i32_0 = arith.constant 0 : i32
    %c0_i32_1 = arith.constant 0 : i32
    return %c0_i32, %c0_i32_0 : i32, i32
  }
  func.func @transform_3(%arg0: i32) -> (i32, i32) {
    %c0_i32 = arith.constant 0 : i32
    %c0_i32_0 = arith.constant 0 : i32
    %c0_i32_1 = arith.constant 0 : i32
    return %c0_i32, %c0_i32_0 : i32, i32
  }
  func.func @transform_4(%arg0: i32) -> (i32, i32) {
    %c0_i32 = arith.constant 0 : i32
    %c0_i32_0 = arith.constant 0 : i32
    %c0_i32_1 = arith.constant 0 : i32
    return %c0_i32, %c0_i32_0 : i32, i32
  }
  func.func @transform_5(%arg0: i32) -> (i32, i32, i32) {
    %c0_i32 = arith.constant 0 : i32
    %c0_i32_0 = arith.constant 0 : i32
    %c0_i32_1 = arith.constant 0 : i32
    return %arg0, %c0_i32, %c0_i32_0 : i32, i32, i32
  }
}

</mosaic_0001>

<bundles_post_ra>
// kernel: vig_block.3
= control target key start
LH: loop header
LB: loop body
LE: loop exit
PB: predicated region body
PF: predicated region fallthrough
CT: control target
= control target key end

     0   :  { %12 = vsyncpa [#allocation3], 0  ;;  %s946_s0 = inlined_call_operand.hbm [shape: f32[2,16,16], index: 0, kind: input, shape index: {}]   ;;  %s947_s1 = inlined_call_operand.vmem [shape: bf16[16,16], index: 1, kind: input, shape index: {}]   ;;  %s948_s2 = inlined_call_operand.vmem [shape: f32[1,16], index: 2, kind: input, shape index: {}]   ;;  %s949_s3 = inlined_call_operand.vmem [shape: bf16[16,16], index: 3, kind: input, shape index: {}]   ;;  %s950_s4 = inlined_call_operand.vmem [shape: f32[1,16], index: 4, kind: input, shape index: {}]   ;;  %s951_s5 = inlined_call_operand.vmem [shape: f32[2,16,16], index: 5, kind: output, shape index: {0}]   ;;  %s952_s6 = inlined_call_operand.vmem [shape: f32[2,16,16], index: 6, kind: output, shape index: {1}]  }
   0x1   :  { %14 = vsyncpa [#allocation3 + $0x1], 0  ;;  %s813_s21 = smov 0   ;;  %s815_s22 = smov 0  }
   0x2   :  { %s817_s23 = smov 0   ;;  %s819_s24 = smov 0  }
   0x3 LB: > { %s832_s25 = sadd.s32 4294967295, %s771_s24   ;;  %s835_s26 = sadd.s32 1, %s771_s24   ;;  %s771_s24 = sphi %s819_s24, %s961_s24   ;;  %s767_s23 = sphi %s817_s23, %s960_s23   ;;  %s763_s22 = sphi %s815_s22, %s959_s22   ;;  %s759_s21 = sphi %s813_s21, %s958_s21  }
   0x4   : > { %s24_s27 = ssub.s32 %s771_s24, %s835_s26  ;;  %s27_s28 = sadd.s32 1, %s767_s23 }
   0x5   : > { %p25_p0 = scmp.eq.s32.totalorder %s24_s27, 0  ;;  %p34_p1 = scmp.ne.s32.totalorder %s767_s23, %s763_s22 }
   0x6   : > { %p35_p2 = scmp.eq.s32.totalorder %s771_s24, 0  ;;  %p40_p3 = scmp.ne.s32.totalorder %s763_s22, %s759_s21 }
   0x7   : > { %s845_s29 = scalar_select %p25_p0, %s767_s23, %s27_s28  }
   0x8   : > { %p36_p4 = por %p35_p2, %p34_p1  ;;  %p41_p5 = scmp.eq.s32.totalorder %s832_s25, 0 }
   0x9   : > { %p666_p6 = scmp.lt.s32.totalorder %s771_s24, 2  ;;  %s212_s7 = sand.u32 1, %s767_s23  }
   0xa   : > { %p849_p7 = por %p41_p5, %p40_p3  ;;  %s609_s8 = sshll.u32 %s212_s7, 4 }
   0xb   : > { %s630_s9 = sshll.u32 %s771_s24, 8  ;;  %s216_s13 = scalar_lea.vmem [#allocation2], %s609_s8 }
   0xc   : > { %s954_s30 = scalar_select %p849_p7, 1, 0 }
   0xd   : > { %s858_s12 = scalar_lea.hbm %s946_s0, %s630_s9  ;;  %s223_s14 = sshll.u32 %s216_s13, 4  ;;  %s860_s14 = int_to_ptr.vmem [resolvable:$true] %s223_s14 }
   0xe   : > { %p862_p8 = pnand %p666_p6, %p36_p4  ;;  %s867_s16 = scalar_lea.sflag [#allocation3], %s212_s7 }
   0xf   : > { %s709_s17 = scalar_lea.hbm %s858_s12, 256  ;;  %s714_s20 = scalar_lea.hbm %s946_s0, 512 }
  0x10   : > { %p710_p10 = scmp.ne.s32.totalorder %s858_s12, %s709_s17  ;;  %p711_p11 = pneg %p862_p8 }
  0x11   : > { %p715_p0 = scmp.lt.s32.totalorder %s858_s12, %s946_s0  ;;  %p716_p1 = scmp.lt.s32.totalorder %s714_s20, %s709_s17 }
  0x12   : > { %p712_p12 = pnand %p711_p11, %p710_p10 }
  0x13   : > { %p717_p2 = por %p716_p1, %p715_p0 }
  0x14   : > { %p713_p13 = pneg %p712_p12 }
  0x16   : > { %p718_p3 = pnand %p717_p2, %p713_p13 }
  0x18   : > { %721 = shalt.err (!%p718_p3)
}
  0x19   : > { %s722_s28 = scalar_lea.vmem %s860_s14, 256  ;;  %s773_s7 = smov [#allocation2]  }
  0x1a   : > { %p723_p4 = scmp.ne.s32.totalorder %s860_s14, %s722_s28  ;;  %s727_s8 = sshll.u32 %s773_s7, 4  ;;  %s728_s8 = int_to_ptr.vmem [resolvable:$false] %s727_s8 }
  0x1b   : > { %s729_s9 = scalar_lea.vmem %s728_s8, 512  ;;  %p730_p10 = scmp.lt.s32.totalorder %s860_s14, %s728_s8 }
  0x1c   : > { %p725_p5 = pnand %p723_p4, %p711_p11  ;;  %p731_p12 = scmp.lt.s32.totalorder %s729_s9, %s722_s28 }
  0x1e   : > { %p726_p6 = pneg %p725_p5  ;;  %p732_p9 = por %p731_p12, %p730_p10 }
  0x20   : > { %p733_p7 = pnand %p732_p9, %p726_p6 }
  0x22   : > { %736 = shalt.err (!%p733_p7)
}
  0x23   : > { %s774_s10 = smov 128   ;;  %s775_s11 = smov 8  }
  0x24   : > { %665 = dma.hbm_to_vmem [thread:$0]  (!%p862_p8), %s858_s12, 256, %s860_s14, %s867_s16, %s774_s10, %s774_s10, %s775_s11  }
  0x25   : > { %p231_p11 = scmp.lt.s32.totalorder %s771_s24, 3  ;;  %p956_p13 = scmp.ge.s32.totalorder %s771_s24, 1 }
  0x27   : > { %p232_p0 = pnand %p956_p13, %p231_p11 }
  0x28   : > { %s237_s13 = sand.u32 (!%p232_p0), 1, %s763_s22   ;;  %p957_p7 = scmp.ne.s32.totalorder (!%p232_p0), %s954_s30, 0 }
  0x29   : > { %235 = sbr.rel (%p232_p0) target bundleno = 475 (0x1db), region = 40  ;;  %s613_s17 = sshll.u32 (!%p232_p0), %s237_s13, 4 }
  0x2a   : > { %s238_s18 = scalar_lea.sflag (!%p232_p0), [#allocation3], %s237_s13  ;;  %s241_s19 = scalar_lea.vmem (!%p232_p0), [#allocation2], %s613_s17 }
  0x2e   : > { %754 = dma.done.wait (%p957_p7), %s238_s18, 256  }
  0x2f   : > { %756 = vsyncadd (%p957_p7), %s238_s18, 4294967040  ;;  %v776_v0 = vmov 0.0   ;;  %vm777_vm0 = vmmov 0   ;;  %v703_v1 = vld [vmem:[%s947_s1] sm:$0xff]   ;;  %v287_v3 = vld [vmem:[%s241_s19 + $0x8] sm:$0xff]  ;;  %vm288_vm1 = vcmask 130048  }
  0x30   : > { %648 = vmatprep.subr.bf16.mxu1 %v776_v0  ;;  %650 = vmatprep.mubr.msk.bf16.mxu1 %vm777_vm0, %v776_v0  ;;  %v286_v2 = vld [vmem:[%s241_s19] sm:$0xff]  ;;  %p275_p8 = scmp.lt.s32.totalorder %s832_s25, 1 }
  0x31   : > { %649 = vmatpush3.bf16.msra.mxu1 %v703_v1  ;;  %v378_v4 = vpack.c.bf16 %v287_v3, %v286_v2  ;;  %641 = vmatprep.subr.msk.mxu0 %vm288_vm1, %v287_v3  ;;  %v704_v5 = vld [vmem:[%s949_s3] sm:$0xff]  }
  0x32   : > { %642 = vmatpush3.xpose.msk.msra.mxu0 %vm288_vm1, %v287_v3  ;;  %645 = vmatprep.mubr.msk.f32.mxu0 %vm288_vm1, %v286_v2  ;;  %s963_s25 = smov (!%p275_p8, %s832_s25), 1  ;;  %v622_v6 = vld [vmem:[%s948_s2] ss:$0 sm:$0xff] }
  0x33   : > { %643 = vmatprep.subr.msk.mxu0 %vm288_vm1, %v286_v2  ;;  %s631_s20 = sshll.u32 %s963_s25, 4  ;;  %v625_v26 = vld [vmem:[%s950_s4] ss:$0 sm:$0xff] }
  0x34   : > { %651 = vmatmul.mubr.msk.bf16.vlgmr.msra.gmra.mxu1 %vm288_vm1, %v378_v4  ;;  %s279_s28 = scalar_lea.vmem %s951_s5, %s631_s20  ;;  %s284_s10 = scalar_lea.vmem %s952_s6, %s631_s20 }
  0x36   : > { %644 = vmatpush3.xpose.msk.msra.mxu0 %vm288_vm1, %v286_v2 }
  0x37   : > { %654 = vmatprep.subr.bf16.mxu0 %v776_v0 }
  0x39   : > { %646 = vmatmul.mubr.msk.f32.vlgmr.msra.gmra.mxu0 %vm288_vm1, %v287_v3 }
  0x3a   : > { %656 = vmatprep.mubr.msk.bf16.mxu0 %vm777_vm0, %v776_v0  ;;  %655 = vmatpush3.bf16.msra.mxu0 %v704_v5 }
  0xf4   : > { %v428_v7 = vpop.f32.mrf.mxu1 }
  0xf5   : > { %v429_v8 = vadd.f32 %v622_v6, %v428_v7 }
  0xf6   : > { %v652_v9 = vpop.f32.mrf.mxu1 }
  0xf7   : > { %v437_v10 = vmul.f32 0.70710677, %v429_v8  ;;  %v435_v20 = vmul.f32 0.5, %v429_v8 }
  0xf8   : > { %v431_v11 = vpop.f32.mrf.mxu1 }
  0xf9   : > { %705 = verf.f32 %v437_v10  ;;  %v432_v12 = vadd.f32 %v622_v6, %v431_v11  ;;  %v647_v13 = vpop.f32.mrf.mxu0 }
  0xfa   : > { %v653_v14 = vpop.f32.mrf.mxu1  ;;  %371 = vst.msk [vmem:[%s279_s28 + $0x8] sm:$0xff] %vm288_vm1, %v647_v13 }
  0xfb   : > { %v438_v15 = vmul.f32 0.70710677, %v432_v12  ;;  %v361_v16 = vpop.f32.mrf.mxu0  ;;  %v436_v21 = vmul.f32 0.5, %v432_v12 }
  0xfc   : > { %370 = vst.msk [vmem:[%s279_s28] sm:$0xff] %vm288_vm1, %v361_v16 }
  0xfd   : > { %707 = verf.f32 %v438_v15 }
 0x106   : > { %v706_v17 = vpop.eup %705 }
 0x107   : > { %v441_v18 = vadd.f32 1.0, %v706_v17 }
 0x109   : > { %v443_v23 = vmul.f32 %v441_v18, %v435_v20 }
 0x10a   : > { %v708_v19 = vpop.eup %707 }
 0x10b   : > { %v442_v22 = vadd.f32 1.0, %v708_v19 }
 0x10d   : > { %v444_v24 = vmul.f32 %v442_v22, %v436_v21 }
 0x10f   : > { %v445_v25 = vpack.c.bf16 %v444_v24, %v443_v23 }
 0x111   : > { %657 = vmatmul.mubr.msk.bf16.vlgmr.msra.gmra.mxu0 %vm288_vm1, %v445_v25 }
 0x1d1   : > { %v495_v27 = vpop.f32.mrf.mxu0 }
 0x1d2   : > { %v496_v28 = vadd.f32 %v625_v26, %v495_v27 }
 0x1d3   : > { %v658_v29 = vpop.f32.mrf.mxu0 }
 0x1d4   : > { %v502_v30 = vadd.f32 %v496_v28, %v286_v2 }
 0x1d5   : > { %v498_v31 = vpop.f32.mrf.mxu0 }
 0x1d6   : > { %504 = vst.msk [vmem:[%s284_s10] sm:$0xff] %vm288_vm1, %v502_v30  ;;  %v499_v32 = vadd.f32 %v625_v26, %v498_v31 }
 0x1d7   : > { %v659_v33 = vpop.f32.mrf.mxu0 }
 0x1d8   : > { %v503_v34 = vadd.f32 %v499_v32, %v287_v3 }
 0x1da   : > { %505 = vst.msk [vmem:[%s284_s10 + $0x8] sm:$0xff] %vm288_vm1, %v503_v34 }
 0x1db PF: > { %p17_p9 = scmp.ge.s32.totalorder %s835_s26, 4   ;;  %s958_s21 = smov %s763_s22 }
 0x1dc   : > { %s959_s22 = smov %s767_s23  ;;  %s960_s23 = smov %s845_s29 }
 0x1dd   : > { %s961_s24 = smov %s835_s26  ;;  %19 = sbr.rel (!%p17_p9) target bundleno = 3 (0x3), region = 92 }
 0x1e2   :  { %543 = vsyncpa [#allocation3], 1 }
 0x1e3   :  { %545 = vsyncpa [#allocation3 + $0x1], 1 }

// kernel: vig_block.5
= control target key start
LH: loop header
LB: loop body
LE: loop exit
PB: predicated region body
PF: predicated region fallthrough
CT: control target
= control target key end

     0   :  { %s1585_s0 = inlined_call_operand.vmem [shape: f32[32,16], index: 0, kind: input, shape index: {}]   ;;  %s1586_s1 = inlined_call_operand.vmem [shape: f32[32,16], index: 1, kind: input, shape index: {}]   ;;  %s1587_s2 = inlined_call_operand.vmem [shape: bf16[16,16], index: 2, kind: input, shape index: {}]   ;;  %s1588_s3 = inlined_call_operand.vmem [shape: f32[1,16], index: 3, kind: input, shape index: {}]   ;;  %s1589_s4 = inlined_call_operand.vmem [shape: bf16[16,16], index: 4, kind: input, shape index: {}]   ;;  %s1590_s5 = inlined_call_operand.vmem [shape: f32[1,16], index: 5, kind: input, shape index: {}]   ;;  %s1591_s6 = inlined_call_operand.vmem [shape: bf16[16,64], index: 6, kind: input, shape index: {}]   ;;  %s1592_s7 = inlined_call_operand.vmem [shape: f32[1,64], index: 7, kind: input, shape index: {}]   ;;  %s1593_s8 = inlined_call_operand.vmem [shape: bf16[64,16], index: 8, kind: input, shape index: {}]   ;;  %s1594_s9 = inlined_call_operand.vmem [shape: f32[1,16], index: 9, kind: input, shape index: {}]   ;;  %s1595_s10 = inlined_call_operand.vmem [shape: bf16[16,64], index: 10, kind: input, shape index: {}]   ;;  %s1596_s11 = inlined_call_operand.vmem [shape: f32[1,64], index: 11, kind: input, shape index: {}]   ;;  %s1597_s12 = inlined_call_operand.vmem [shape: bf16[64,16], index: 12, kind: input, shape index: {}]   ;;  %s1598_s13 = inlined_call_operand.vmem [shape: f32[1,16], index: 13, kind: input, shape index: {}]   ;;  %s1599_s14 = inlined_call_operand.hbm [shape: f32[32,16], index: 14, kind: output, shape index: {}]  }
   0x1   :  { %1600 = sst [smem:[#allocation5_spill]] %s1585_s0 }
   0x2   :  { %1601 = sst [smem:[#allocation6_spill]] %s1586_s1 }
   0x3   :  { %1602 = sst [smem:[#allocation7_spill]] %s1587_s2 }
   0x4   :  { %1603 = sst [smem:[#allocation8_spill]] %s1588_s3 }
   0x5   :  { %19 = vsyncpa [#allocation3], 0 }
   0x6   :  { %21 = vsyncpa [#allocation3 + $0x1], 0  ;;  %s1378_s29 = smov 0   ;;  %s1380_s30 = smov 0  }
   0x7   :  { %s1382_s15 = smov 0   ;;  %s1384_s16 = smov 0  }
   0x8 LB: > { %s1399_s17 = sadd.s32 4294967295, %s1296_s16   ;;  %s1056_s18 = sadd.s32 4294967294, %s1296_s16   ;;  %s1296_s16 = sphi %s1384_s16, %s1613_s16   ;;  %s1292_s15 = sphi %s1382_s15, %s1612_s15   ;;  %s1288_s30 = sphi %s1380_s30, %s1611_s30   ;;  %s1284_s29 = sphi %s1378_s29, %s1610_s29  }
   0x9   : > { %s1403_s19 = sadd.s32 1, %s1296_s16   ;;  %s338_s20 = sadd.s32 1, %s1292_s15 }
   0xa   : > { %s335_s21 = ssub.s32 %s1296_s16, %s1403_s19  ;;  %p348_p0 = scmp.ne.s32.totalorder %s1292_s15, %s1288_s30 }
   0xb   : > { %p336_p1 = scmp.eq.s32.totalorder %s335_s21, 0  ;;  %p349_p2 = scmp.eq.s32.totalorder %s1399_s17, 1 }
   0xc   : > { %p354_p3 = scmp.ne.s32.totalorder %s1288_s30, %s1284_s29  ;;  %p355_p4 = scmp.eq.s32.totalorder %s1056_s18, 1 }
   0xd   : > { %s1414_s22 = scalar_select %p336_p1, %s1292_s15, %s338_s20  }
   0xe   : > { %p1416_p5 = por %p349_p2, %p348_p0  ;;  %p1420_p6 = por %p355_p4, %p354_p3 }
   0xf   : > { %p1059_p7 = scmp.ge.s32.totalorder %s1296_s16, 1  ;;  %p427_p8 = scmp.lt.s32.totalorder %s1296_s16, 3 }
  0x11   : > { %p428_p9 = pnand %p1059_p7, %p427_p8 }
  0x12   : > { %s1606_s2 = sld [smem:[#allocation7_spill]] (!%p428_p9)  ;;  %s1061_s27 = sshll.u32 (!%p428_p9), %s1399_s17, 1 }
  0x13   : > { %431 = sbr.rel (%p428_p9) target bundleno = 1359 (0x54f), region = 76  ;;  %p479_p10 = scmp.lt.s32.totalorder (!%p428_p9), %s1061_s27, 3 }
  0x14   : > { %s1607_s0 = sld [smem:[#allocation5_spill]] (!%p428_p9)  ;;  %s475_s26 = sand.u32 (!%p428_p9), 1, %s1288_s30  }
  0x15   : > { %s1608_s3 = sld [smem:[#allocation8_spill]] (!%p428_p9) }
  0x16   : > { %s1609_s1 = sld [smem:[#allocation6_spill]] (!%p428_p9) }
  0x18   : > { %v1204_v0 = vld [vmem:[%s1606_s2] sm:$0xff]   ;;  %v1298_v1 = vmov 0.0   ;;  %vm1299_vm0 = vmmov 0   ;;  %s1615_s27 = smov (!%p479_p10, %s1061_s27), 3  ;;  %vm525_vm1 = vcmask 130048   ;;  %v1207_v49 = vld [vmem:[%s1593_s8 + $0x18] sm:$0xff]  }
  0x19   : > { %1113 = vmatprep.subr.bf16.mxu1 %v1298_v1  ;;  %1125 = vmatprep.subr.bf16.mxu0 %v1298_v1  ;;  %s1062_s28 = sshll.u32 %s1615_s27, 3  ;;  %v1205_v15 = vld [vmem:[%s1589_s4] sm:$0xff]   ;;  %v1208_v50 = vld [vmem:[%s1593_s8 + $0x10] sm:$0xff]   ;;  %v1209_v51 = vld [vmem:[%s1593_s8 + $0x8] sm:$0xff]   ;;  %vm751_vm2 = vcmask 523264   ;;  %s1094_s27 = sshll.u32 %s1399_s17, 8 }
  0x1a   : > { %1114 = vmatpush3.bf16.msra.mxu1 %v1204_v0  ;;  %1115 = vmatprep.mubr.msk.bf16.mxu1 %vm1299_vm0, %v1298_v1  ;;  %s482_s21 = scalar_lea.vmem %s1607_s0, %s1062_s28  ;;  %v1206_v34 = vld [vmem:[%s1591_s6] sm:$0xff]   ;;  %s1060_s0 = sshll.u32 %s475_s26, 4 }
  0x1b   : > { %1119 = vmatprep.subr.bf16.mxu1 %v1298_v1  ;;  %1127 = vmatprep.mubr.msk.bf16.mxu0 %vm1299_vm0, %v1298_v1  ;;  %v494_v2 = vld [vmem:[%s482_s21] sm:$0xff]  ;;  %v495_v3 = vld [vmem:[%s482_s21 + $0x8] sm:$0xff]  ;;  %s1539_s18 = scalar_lea.hbm %s1599_s14, %s1094_s27  ;;  %s1545_s17 = scalar_lea.sflag [#allocation3], %s475_s26 }
  0x1c   : > { %v498_v4 = vmul.f32 0.70710677, %v494_v2  ;;  %v499_v5 = vmul.f32 0.70710677, %v495_v3  ;;  %v496_v6 = vmul.f32 0.5, %v494_v2  ;;  %v497_v8 = vmul.f32 0.5, %v495_v3  ;;  %1126 = vmatpush3.bf16.msra.mxu0 %v1206_v34  ;;  %s488_s2 = scalar_lea.vmem %s1609_s1, %s1062_s28 }
  0x1d   : > { %v1065_v16 = vld [vmem:[%s1608_s3] ss:$0 sm:$0xff]  ;;  %1143 = vmatprep.subr.bf16.mxu0 %v1298_v1  ;;  %v493_v43 = vld [vmem:[%s488_s2 + $0x8] sm:$0xff] }
  0x1e   : > { %1216 = verf.f32 %v498_v4  ;;  %v1068_v35 = vld [vmem:[%s1590_s5] ss:$0 sm:$0xff] }
  0x1f   : > { %1218 = verf.f32 %v499_v5  ;;  %v492_v42 = vld [vmem:[%s488_s2] sm:$0xff]  ;;  %s477_s2 = scalar_lea.vmem [#allocation2], %s1060_s0  ;;  %s1300_s0 = smov [#allocation2]  }
  0x20   : > { %v1210_v52 = vld [vmem:[%s1593_s8] sm:$0xff]   ;;  %s982_s28 = sshll.u32 %s477_s2, 4  ;;  %s1240_s21 = sshll.u32 %s1300_s0, 4  ;;  %s1541_s28 = int_to_ptr.vmem [resolvable:$true] %s982_s28  ;;  %s1241_s21 = int_to_ptr.vmem [resolvable:$false] %s1240_s21 }
  0x21   : > { %v1071_v53 = vld [vmem:[%s1592_s7] ss:$0 sm:$0xff]  ;;  %s1236_s20 = scalar_lea.vmem %s1541_s28, 256  ;;  %s1242_s27 = scalar_lea.vmem %s1241_s21, 512 }
  0x22   : > { %p1237_p11 = scmp.ne.s32.totalorder %s1541_s28, %s1236_s20  ;;  %p1243_p0 = scmp.lt.s32.totalorder %s1541_s28, %s1241_s21 }
  0x23   : > { %p1244_p1 = scmp.lt.s32.totalorder %s1242_s27, %s1236_s20 }
  0x24   : > { %p1238_p12 = pnand %p1237_p11, %p1416_p5 }
  0x25   : > { %p1245_p2 = por %p1244_p1, %p1243_p0 }
  0x26   : > { %p1239_p13 = pneg %p1238_p12 }
  0x28   : > { %p1246_p3 = pnand %p1245_p2, %p1239_p13 }
  0x2b   : > { %v1217_v7 = vpop.eup %1216 }
  0x2c   : > { %v1219_v9 = vpop.eup %1218  ;;  %v502_v10 = vadd.f32 1.0, %v1217_v7 }
  0x2d   : > { %v503_v11 = vadd.f32 1.0, %v1219_v9  ;;  %v1074_v9 = vld [vmem:[%s1594_s9] ss:$0 sm:$0xff] }
  0x2e   : > { %v504_v12 = vmul.f32 %v502_v10, %v496_v6 }
  0x2f   : > { %v505_v13 = vmul.f32 %v503_v11, %v497_v8  ;;  %v1211_v8 = vld [vmem:[%s1595_s10] sm:$0xff]  }
  0x31   : > { %v512_v14 = vpack.c.bf16 %v505_v13, %v504_v12 }
  0x33   : > { %1116 = vmatmul.mubr.msk.bf16.vlgmr.msra.gmra.mxu1 %vm525_vm1, %v512_v14 }
  0x34   : > { %1121 = vmatprep.mubr.msk.bf16.mxu1 %vm1299_vm0, %v1298_v1  ;;  %1120 = vmatpush3.bf16.msra.mxu1 %v1205_v15 }
  0x35   : > { %1131 = vmatprep.subr.bf16.mxu1 %v1298_v1 }
  0xf3   : > { %v563_v17 = vpop.f32.mrf.mxu1 }
  0xf4   : > { %v564_v18 = vadd.f32 %v1065_v16, %v563_v17 }
  0xf5   : > { %v1117_v19 = vpop.f32.mrf.mxu1 }
  0xf6   : > { %v572_v20 = vmul.f32 0.70710677, %v564_v18  ;;  %v570_v28 = vmul.f32 0.5, %v564_v18 }
  0xf7   : > { %v566_v21 = vpop.f32.mrf.mxu1 }
  0xf8   : > { %1220 = verf.f32 %v572_v20  ;;  %v567_v22 = vadd.f32 %v1065_v16, %v566_v21 }
  0xf9   : > { %v1118_v23 = vpop.f32.mrf.mxu1 }
  0xfa   : > { %v573_v24 = vmul.f32 0.70710677, %v567_v22  ;;  %v571_v29 = vmul.f32 0.5, %v567_v22 }
  0xfc   : > { %1222 = verf.f32 %v573_v24 }
 0x105   : > { %v1221_v25 = vpop.eup %1220 }
 0x106   : > { %v576_v26 = vadd.f32 1.0, %v1221_v25 }
 0x108   : > { %v578_v31 = vmul.f32 %v576_v26, %v570_v28 }
 0x109   : > { %v1223_v27 = vpop.eup %1222 }
 0x10a   : > { %v577_v30 = vadd.f32 1.0, %v1223_v27 }
 0x10c   : > { %v579_v32 = vmul.f32 %v577_v30, %v571_v29  ;;  %v1212_v29 = vld [vmem:[%s1597_s12 + $0x18] sm:$0xff]   ;;  %v1213_v30 = vld [vmem:[%s1597_s12 + $0x10] sm:$0xff]  }
 0x10e   : > { %v580_v33 = vpack.c.bf16 %v579_v32, %v578_v31  ;;  %v1214_v31 = vld [vmem:[%s1597_s12 + $0x8] sm:$0xff]   ;;  %v1215_v32 = vld [vmem:[%s1597_s12] sm:$0xff]  }
 0x110   : > { %1122 = vmatmul.mubr.msk.bf16.vlgmr.msra.gmra.mxu1 %vm525_vm1, %v580_v33  ;;  %v1080_v33 = vld [vmem:[%s1596_s11] ss:$0 sm:$0xff] }
 0x111   : > { %1139 = vmatprep.mubr.msk.bf16.mxu1 %vm1299_vm0, %v1298_v1  ;;  %1132 = vmatpush3.bf16.msra.mxu1 %v1207_v49 }
 0x112   : > { %1133 = vmatprep.subr.bf16.mxu1 %v1298_v1 }
 0x115   : > { %1134 = vmatpush3.bf16.msra.mxu1 %v1208_v50 }
 0x116   : > { %1135 = vmatprep.subr.bf16.mxu1 %v1298_v1 }
 0x119   : > { %1136 = vmatpush3.bf16.msra.mxu1 %v1209_v51 }
 0x11a   : > { %1137 = vmatprep.subr.bf16.mxu1 %v1298_v1 }
 0x11d   : > { %1138 = vmatpush3.bf16.msra.mxu1 %v1210_v52  ;;  %v1083_v52 = vld [vmem:[%s1598_s13] ss:$0 sm:$0xff] }
 0x1d0   : > { %v630_v36 = vpop.f32.mrf.mxu1 }
 0x1d1   : > { %v631_v37 = vadd.f32 %v1068_v35, %v630_v36 }
 0x1d2   : > { %v1123_v38 = vpop.f32.mrf.mxu1 }
 0x1d3   : > { %v637_v40 = vadd.f32 %v631_v37, %v504_v12 }
 0x1d4   : > { %v633_v39 = vpop.f32.mrf.mxu1 }
 0x1d5   : > { %v634_v41 = vadd.f32 %v1068_v35, %v633_v39  ;;  %v1470_v46 = vadd.f32 %v637_v40, %v492_v42 }
 0x1d6   : > { %v1124_v44 = vpop.f32.mrf.mxu1 }
 0x1d7   : > { %v638_v45 = vadd.f32 %v634_v41, %v505_v13 }
 0x1d9   : > { %v1472_v47 = vadd.f32 %v638_v45, %v493_v43 }
 0x1db   : > { %v653_v48 = vpack.c.bf16 %v1472_v47, %v1470_v46 }
 0x1dd   : > { %1128 = vmatmul.mubr.msk.bf16.vlgmr.msra.gmra.mxu0 %vm525_vm1, %v653_v48 }
 0x1de   : > { %1145 = vmatprep.mubr.msk.bf16.mxu0 %vm1299_vm0, %v1298_v1  ;;  %1144 = vmatpush3.bf16.msra.mxu0 %v1211_v8 }
 0x1df   : > { %1149 = vmatprep.subr.bf16.mxu0 %v1298_v1 }
 0x29d   : > { %v703_v54 = vpop.f32.mrf.mxu0 }
 0x29e   : > { %v704_v55 = vadd.f32 %v1071_v53, %v703_v54 }
 0x29f   : > { %v1129_v56 = vpop.f32.mrf.mxu0 }
 0x2a0   : > { %v712_v57 = vmul.f32 0.70710677, %v704_v55  ;;  %v710_v2 = vmul.f32 0.5, %v704_v55 }
 0x2a1   : > { %v706_v58 = vpop.f32.mrf.mxu0 }
 0x2a2   : > { %1224 = verf.f32 %v712_v57  ;;  %v707_v59 = vadd.f32 %v1071_v53, %v706_v58 }
 0x2a3   : > { %v1130_v60 = vpop.f32.mrf.mxu0 }
 0x2a4   : > { %v713_v61 = vmul.f32 0.70710677, %v707_v59  ;;  %v711_v3 = vmul.f32 0.5, %v707_v59 }
 0x2a6   : > { %1226 = verf.f32 %v713_v61 }
 0x2af   : > { %v1225_v62 = vpop.eup %1224 }
 0x2b0   : > { %v716_v63 = vadd.f32 1.0, %v1225_v62 }
 0x2b2   : > { %v718_v5 = vmul.f32 %v716_v63, %v710_v2 }
 0x2b3   : > { %v1227_v0 = vpop.eup %1226 }
 0x2b4   : > { %v717_v4 = vadd.f32 1.0, %v1227_v0 }
 0x2b6   : > { %v719_v6 = vmul.f32 %v717_v4, %v711_v3 }
 0x2b8   : > { %v720_v7 = vpack.c.bf16 %v719_v6, %v718_v5 }
 0x2ba   : > { %1140 = vmatmul.mubr.msk.bf16.vlgmr.msra.gmra.mxu1 %vm751_vm2, %v720_v7 }
 0x37a   : > { %v789_v10 = vpop.f32.mrf.mxu1 }
 0x37b   : > { %v790_v11 = vadd.f32 %v1074_v9, %v789_v10 }
 0x37c   : > { %v1141_v12 = vpop.f32.mrf.mxu1 }
 0x37d   : > { %v796_v13 = vadd.f32 %v790_v11, %v1470_v46 }
 0x37e   : > { %v792_v14 = vpop.f32.mrf.mxu1 }
 0x37f   : > { %v800_v15 = vmul.f32 0.70710677, %v796_v13  ;;  %v793_v16 = vadd.f32 %v1074_v9, %v792_v14  ;;  %v798_v23 = vmul.f32 0.5, %v796_v13 }
 0x380   : > { %v1142_v17 = vpop.f32.mrf.mxu1 }
 0x381   : > { %1228 = verf.f32 %v800_v15  ;;  %v797_v18 = vadd.f32 %v793_v16, %v1472_v47 }
 0x383   : > { %v801_v19 = vmul.f32 0.70710677, %v797_v18  ;;  %v799_v24 = vmul.f32 0.5, %v797_v18 }
 0x385   : > { %1230 = verf.f32 %v801_v19 }
 0x38e   : > { %v1229_v20 = vpop.eup %1228 }
 0x38f   : > { %v804_v21 = vadd.f32 1.0, %v1229_v20 }
 0x391   : > { %v806_v26 = vmul.f32 %v804_v21, %v798_v23 }
 0x392   : > { %v1231_v22 = vpop.eup %1230 }
 0x393   : > { %v805_v25 = vadd.f32 1.0, %v1231_v22 }
 0x395   : > { %v807_v27 = vmul.f32 %v805_v25, %v799_v24 }
 0x397   : > { %v820_v28 = vpack.c.bf16 %v807_v27, %v806_v26 }
 0x399   : > { %1146 = vmatmul.mubr.msk.bf16.vlgmr.msra.gmra.mxu0 %vm525_vm1, %v820_v28 }
 0x39a   : > { %1157 = vmatprep.mubr.msk.bf16.mxu0 %vm1299_vm0, %v1298_v1  ;;  %1150 = vmatpush3.bf16.msra.mxu0 %v1212_v29 }
 0x39b   : > { %1151 = vmatprep.subr.bf16.mxu0 %v1298_v1 }
 0x39e   : > { %1152 = vmatpush3.bf16.msra.mxu0 %v1213_v30 }
 0x39f   : > { %1153 = vmatprep.subr.bf16.mxu0 %v1298_v1 }
 0x3a2   : > { %1154 = vmatpush3.bf16.msra.mxu0 %v1214_v31 }
 0x3a3   : > { %1155 = vmatprep.subr.bf16.mxu0 %v1298_v1 }
 0x3a6   : > { %1156 = vmatpush3.bf16.msra.mxu0 %v1215_v32 }
 0x459   : > { %v870_v34 = vpop.f32.mrf.mxu0 }
 0x45a   : > { %v871_v35 = vadd.f32 %v1080_v33, %v870_v34 }
 0x45b   : > { %v1147_v36 = vpop.f32.mrf.mxu0 }
 0x45c   : > { %v879_v37 = vmul.f32 0.70710677, %v871_v35  ;;  %v877_v44 = vmul.f32 0.5, %v871_v35 }
 0x45d   : > { %v873_v38 = vpop.f32.mrf.mxu0 }
 0x45e   : > { %1232 = verf.f32 %v879_v37  ;;  %v874_v39 = vadd.f32 %v1080_v33, %v873_v38 }
 0x45f   : > { %v1148_v40 = vpop.f32.mrf.mxu0 }
 0x460   : > { %v880_v41 = vmul.f32 0.70710677, %v874_v39  ;;  %v878_v45 = vmul.f32 0.5, %v874_v39 }
 0x462   : > { %1234 = verf.f32 %v880_v41 }
 0x46b   : > { %v1233_v1 = vpop.eup %1232 }
 0x46c   : > { %v883_v42 = vadd.f32 1.0, %v1233_v1 }
 0x46e   : > { %v885_v49 = vmul.f32 %v883_v42, %v877_v44 }
 0x46f   : > { %v1235_v43 = vpop.eup %1234 }
 0x470   : > { %v884_v48 = vadd.f32 1.0, %v1235_v43 }
 0x472   : > { %v886_v50 = vmul.f32 %v884_v48, %v878_v45 }
 0x474   : > { %v887_v51 = vpack.c.bf16 %v886_v50, %v885_v49 }
 0x476   : > { %1158 = vmatmul.mubr.msk.bf16.vlgmr.msra.gmra.mxu0 %vm751_vm2, %v887_v51 }
 0x536   : > { %v955_v53 = vpop.f32.mrf.mxu0 }
 0x537   : > { %v956_v54 = vadd.f32 %v1083_v52, %v955_v53 }
 0x538   : > { %v1159_v55 = vpop.f32.mrf.mxu0 }
 0x539   : > { %v962_v56 = vadd.f32 %v956_v54, %v806_v26 }
 0x53a   : > { %v958_v57 = vpop.f32.mrf.mxu0 }
 0x53b   : > { %v964_v58 = vadd.f32 %v962_v56, %v1470_v46  ;;  %v959_v59 = vadd.f32 %v1083_v52, %v958_v57 }
 0x53c   : > { %v1160_v60 = vpop.f32.mrf.mxu0 }
 0x53d   : > { %966 = vst.msk [vmem:[%s477_s2] sm:$0xff] %vm525_vm1, %v964_v58  ;;  %v963_v61 = vadd.f32 %v959_v59, %v807_v27 }
 0x53f   : > { %v965_v46 = vadd.f32 %v963_v61, %v1472_v47 }
 0x541   : > { %967 = vst.msk [vmem:[%s477_s2 + $0x8] sm:$0xff] %vm525_vm1, %v965_v46 }
 0x542   : > { %1249 = shalt.err (!%p1246_p3)
}
 0x543   : > { %s1250_s26 = scalar_lea.hbm %s1539_s18, 256  ;;  %s1254_s0 = scalar_lea.hbm %s1599_s14, 512 }
 0x544   : > { %p1251_p4 = scmp.ne.s32.totalorder %s1539_s18, %s1250_s26  ;;  %p1255_p9 = scmp.lt.s32.totalorder %s1539_s18, %s1599_s14 }
 0x545   : > { %p1256_p10 = scmp.lt.s32.totalorder %s1254_s0, %s1250_s26 }
 0x546   : > { %p1252_p7 = pnand %p1251_p4, %p1416_p5 }
 0x547   : > { %p1257_p11 = por %p1256_p10, %p1255_p9 }
 0x548   : > { %p1253_p8 = pneg %p1252_p7 }
 0x54a   : > { %p1258_p12 = pnand %p1257_p11, %p1253_p8 }
 0x54c   : > { %1261 = shalt.err (!%p1258_p12)
}
 0x54d   : > { %s1301_s20 = smov 128   ;;  %s1302_s21 = smov 8  }
 0x54e   : > { %1161 = dma.vmem_to_hbm [thread:$0]  (%p1416_p5), %s1541_s28, 256, %s1539_s18, %s1545_s17, %s1301_s20, %s1301_s20, %s1302_s21  }
 0x54f PF: > { %p1167_p13 = scmp.ge.s32.totalorder %s1296_s16, 2  ;;  %s997_s27 = sand.u32 1, %s1284_s29  }
 0x550   : > { %s998_s1 = scalar_lea.sflag [#allocation3], %s997_s27 }
 0x551   : > { %p1164_p0 = pnand %p1167_p13, %p1420_p6 }
 0x553   : > { %p1165_p1 = pneg %p1164_p0 }
 0x555   : > { %1279 = dma.done.wait (%p1165_p1), %s998_s1, 256  }
 0x556   : > { %1281 = vsyncadd (%p1165_p1), %s998_s1, 4294967040  ;;  %p24_p2 = scmp.ge.s32.totalorder %s1403_s19, 4   ;;  %s1610_s29 = smov %s1288_s30 }
 0x557   : > { %s1611_s30 = smov %s1292_s15  ;;  %s1612_s15 = smov %s1414_s22 }
 0x558   : > { %s1613_s16 = smov %s1403_s19  ;;  %26 = sbr.rel (!%p24_p2) target bundleno = 8 (0x8), region = 114 }
 0x55d   :  { %1003 = vsyncpa [#allocation3], 1 }
 0x55e   :  { %1005 = vsyncpa [#allocation3 + $0x1], 1 }

// kernel: vig_block.4
= control target key start
LH: loop header
LB: loop body
LE: loop exit
PB: predicated region body
PF: predicated region fallthrough
CT: control target
= control target key end

     0   :  { %s1548_s18 = smov 0   ;;  %s1690_s0 = inlined_call_operand.vmem [shape: f32[2,16,16], index: 0, kind: input, shape index: {}]   ;;  %s1691_s1 = inlined_call_operand.vmem [shape: s32[2,16,9], index: 1, kind: input, shape index: {}]   ;;  %s1692_s2 = inlined_call_operand.vmem [shape: bf16[16,16], index: 2, kind: input, shape index: {}]   ;;  %s1693_s3 = inlined_call_operand.vmem [shape: bf16[16,16], index: 3, kind: input, shape index: {}]   ;;  %s1694_s4 = inlined_call_operand.vmem [shape: f32[1,16], index: 4, kind: input, shape index: {}]   ;;  %s1695_s5 = inlined_call_operand.vmem [shape: f32[2,16,16], index: 5, kind: output, shape index: {}]  }
   0x1 LB: > { %s1292_s19 = sadd.s32 4294967295, %s1505_s18   ;;  %p1296_p0 = scmp.ge.s32.totalorder %s1505_s18, 1  ;;  %s1505_s18 = sphi %s1548_s18, %s15_s18  }
   0x2   : > { %p197_p1 = scmp.lt.s32.totalorder %s1505_s18, 3 }
   0x4   : > { %p198_p2 = pnand %p1296_p0, %p197_p1 }
   0x5   : > { %p230_p3 = scmp.lt.s32.totalorder (!%p198_p2), %s1292_s19, 1 }
   0x6   : > { %201 = sbr.rel (%p198_p2) target bundleno = 591 (0x24f), region = 40 }
   0xb   : > { %v1507_v0 = vmov 1   ;;  %v1508_v1 = vmov 0   ;;  %s1697_s19 = smov (!%p230_p3, %s1292_s19), 1  ;;  %v1509_v6 = vmov 2   ;;  %v1510_v7 = vmov 3   ;;  %v1497_v52 = vld [vmem:[%s1692_s2] sm:$0xff]  }
   0xc   : > { %1484 = vset.pattern.permute.xlu1 %v1507_v0  ;;  %1483 = vset.pattern.permute.xlu0 %v1508_v1  ;;  %s1556_s20 = sshll.u32 %s1697_s19, 4  ;;  %v1511_v8 = vmov 4   ;;  %v1512_v9 = vmov 5   ;;  %v1513_v10 = vmov 6   ;;  %v1514_v11 = vmov 8   ;;  %v1498_v54 = vld [vmem:[%s1693_s3] sm:$0xff]  }
   0xd   : > { %s239_s23 = scalar_lea.vmem %s1691_s1, %s1556_s20  ;;  %s234_s26 = scalar_lea.vmem %s1690_s0, %s1556_s20  ;;  %v1515_v12 = vmov 7   ;;  %v250_v13 = vlaneseq  ;;  %vm264_vm0 = vcmask 130048   ;;  %v1516_v17 = vmov 0.0  }
   0xe   : > { %v248_v2 = vld [vmem:[%s239_s23] sm:$0xff]  ;;  %v1566_v3 = vld [vmem:[%s234_s26 + $0x8] sm:$0xff]  ;;  %s244_s10 = scalar_lea.vmem %s1695_s5, %s1556_s20 }
   0xf   : > { %347 = vperm.xlu1 %1484, %v248_v2   ;;  %v1568_v4 = vld [vmem:[%s234_s26] sm:$0xff]  ;;  %253 = vperm.xlu0 %1483, %v248_v2   ;;  %v249_v5 = vld [vmem:[%s239_s23 + $0x8] sm:$0xff]  ;;  %v1580_v14 = vand.u32 127, %v250_v13 }
  0x10   : > { %1389 = vmatprep.subr.mxu0 %v1566_v3  ;;  %1396 = vmatprep.subr.mxu1 %v1566_v3  ;;  %v1108_v53 = vpack.c.bf16 %v1566_v3, %v1568_v4 }
  0x11   : > { %1390 = vmatpush3.msra.mxu0 %v1566_v3  ;;  %1397 = vmatpush3.msra.mxu1 %v1566_v3 }
  0x12   : > { %1391 = vmatprep.subr.mxu0 %v1568_v4  ;;  %1398 = vmatprep.subr.mxu1 %v1568_v4 }
  0x13   : > { %350 = vperm.xlu1 %1484, %v249_v5   ;;  %256 = vperm.xlu0 %1483, %v249_v5  }
  0x14   : > { %1392 = vmatpush3.msra.mxu0 %v1568_v4  ;;  %1399 = vmatpush3.msra.mxu1 %v1568_v4 }
  0x15   : > { %1403 = vmatprep.subr.mxu0 %v1566_v3  ;;  %1410 = vmatprep.subr.mxu1 %v1566_v3 }
  0x17   : > { %1486 = vset.pattern.permute.xlu1 %v1509_v6  ;;  %1485 = vset.pattern.permute.xlu0 %v1509_v6 }
  0x18   : > { %445 = vperm.xlu1 %1486, %v249_v5   ;;  %442 = vperm.xlu0 %1485, %v248_v2  }
  0x1c   : > { %1487 = vset.pattern.permute.xlu1 %v1510_v7  ;;  %1488 = vset.pattern.permute.xlu0 %v1510_v7 }
  0x1d   : > { %537 = vperm.xlu1 %1487, %v248_v2   ;;  %540 = vperm.xlu0 %1488, %v249_v5  }
  0x21   : > { %1489 = vset.pattern.permute.xlu1 %v1511_v8  ;;  %1490 = vset.pattern.permute.xlu0 %v1512_v9 }
  0x22   : > { %632 = vperm.xlu1 %1489, %v248_v2   ;;  %727 = vperm.xlu0 %1490, %v248_v2  }
  0x26   : > { %635 = vperm.xlu1 %1489, %v249_v5   ;;  %1493 = vset.pattern.permute.xlu0 %v1513_v10 }
  0x27   : > { %825 = vperm.xlu0 %1493, %v249_v5  }
  0x2a   : > { %1491 = vset.pattern.permute.xlu1 %v1512_v9 }
  0x2b   : > { %730 = vperm.xlu1 %1491, %v249_v5   ;;  %1495 = vset.pattern.permute.xlu0 %v1514_v11 }
  0x2c   : > { %1012 = vperm.xlu0 %1495, %v248_v2  }
  0x2f   : > { %1492 = vset.pattern.permute.xlu1 %v1513_v10 }
  0x30   : > { %822 = vperm.xlu1 %1492, %v248_v2  }
  0x34   : > { %1494 = vset.pattern.permute.xlu1 %v1515_v12 }
  0x35   : > { %917 = vperm.xlu1 %1494, %v248_v2  }
  0x39   : > { %920 = vperm.xlu1 %1494, %v249_v5  }
  0x3d   : > { %1496 = vset.pattern.permute.xlu1 %v1514_v11 }
  0x3e   : > { %1015 = vperm.xlu1 %1496, %v249_v5  }
  0x8a   : > { %v348_v15 = vpop.permute.xlu1 %347  ;;  %v254_v16 = vpop.permute.xlu0 %253 }
  0x8b   : > { %vm352_vm1 = vcmp.eq.s32.totalorder %v1580_v14, %v348_v15  ;;  %vm258_vm2 = vcmp.eq.s32.totalorder %v1580_v14, %v254_v16 }
  0x8c   : > { %v1307_v18 = vsel %vm352_vm1, 1.0, %v1516_v17  ;;  %v1303_v19 = vsel %vm258_vm2, 1.0, %v1516_v17 }
  0x8d   : > { %1400 = vmatprep.mubr.msk.f32.mxu1 %vm264_vm0, %v1307_v18  ;;  %1393 = vmatprep.mubr.msk.f32.mxu0 %vm264_vm0, %v1303_v19 }
  0x8e   : > { %v351_v20 = vpop.permute.xlu1 %350  ;;  %v257_v21 = vpop.permute.xlu0 %256 }
  0x8f   : > { %vm353_vm3 = vcmp.eq.s32.totalorder %v1580_v14, %v351_v20  ;;  %vm259_vm4 = vcmp.eq.s32.totalorder %v1580_v14, %v257_v21 }
  0x90   : > { %v1308_v22 = vsel %vm353_vm3, 1.0, %v1516_v17  ;;  %v1304_v23 = vsel %vm259_vm4, 1.0, %v1516_v17  ;;  %vm1517_vm4 = vmmov 0  }
  0x91   : > { %1394 = vmatmul.mubr.msk.f32.vlgmr.msra.gmra.mxu0 %vm264_vm0, %v1304_v23  ;;  %1401 = vmatmul.mubr.msk.f32.vlgmr.msra.gmra.mxu1 %vm264_vm0, %v1308_v22 }
  0x92   : > { %1404 = vmatpush3.msra.mxu0 %v1566_v3  ;;  %1411 = vmatpush3.msra.mxu1 %v1566_v3 }
  0x93   : > { %v446_v24 = vpop.permute.xlu1 %445  ;;  %v443_v25 = vpop.permute.xlu0 %442  ;;  %1405 = vmatprep.subr.mxu0 %v1568_v4  ;;  %1412 = vmatprep.subr.mxu1 %v1568_v4 }
  0x94   : > { %vm448_vm5 = vcmp.eq.s32.totalorder %v1580_v14, %v446_v24  ;;  %vm447_vm6 = vcmp.eq.s32.totalorder %v1580_v14, %v443_v25  ;;  %1406 = vmatpush3.msra.mxu0 %v1568_v4  ;;  %1413 = vmatpush3.msra.mxu1 %v1568_v4 }
  0x95   : > { %v1312_v26 = vsel %vm448_vm5, 1.0, %v1516_v17  ;;  %v1311_v27 = vsel %vm447_vm6, 1.0, %v1516_v17  ;;  %1417 = vmatprep.subr.mxu0 %v1566_v3  ;;  %1424 = vmatprep.subr.mxu1 %v1566_v3 }
  0x96   : > { %1407 = vmatprep.mubr.msk.f32.mxu0 %vm264_vm0, %v1311_v27 }
  0x97   : > { %1408 = vmatmul.mubr.msk.f32.vlgmr.msra.gmra.mxu0 %vm264_vm0, %v1312_v26 }
  0x98   : > { %v538_v28 = vpop.permute.xlu1 %537  ;;  %v541_v29 = vpop.permute.xlu0 %540  ;;  %1418 = vmatpush3.msra.mxu0 %v1566_v3 }
  0x99   : > { %vm542_vm7 = vcmp.eq.s32.totalorder %v1580_v14, %v538_v28  ;;  %vm543_vm8 = vcmp.eq.s32.totalorder %v1580_v14, %v541_v29  ;;  %1419 = vmatprep.subr.mxu0 %v1568_v4 }
  0x9a   : > { %v1315_v30 = vsel %vm542_vm7, 1.0, %v1516_v17  ;;  %v1316_v31 = vsel %vm543_vm8, 1.0, %v1516_v17  ;;  %1420 = vmatpush3.msra.mxu0 %v1568_v4 }
  0x9b   : > { %1414 = vmatprep.mubr.msk.f32.mxu1 %vm264_vm0, %v1315_v30  ;;  %1431 = vmatprep.subr.mxu0 %v1566_v3 }
  0x9c   : > { %1415 = vmatmul.mubr.msk.f32.vlgmr.msra.gmra.mxu1 %vm264_vm0, %v1316_v31 }
  0x9d   : > { %v633_v32 = vpop.permute.xlu1 %632  ;;  %v728_v33 = vpop.permute.xlu0 %727  ;;  %1425 = vmatpush3.msra.mxu1 %v1566_v3 }
  0x9e   : > { %vm637_vm9 = vcmp.eq.s32.totalorder %v1580_v14, %v633_v32  ;;  %vm732_vm10 = vcmp.eq.s32.totalorder %v1580_v14, %v728_v33  ;;  %1426 = vmatprep.subr.mxu1 %v1568_v4 }
  0x9f   : > { %v1319_v34 = vsel %vm637_vm9, 1.0, %v1516_v17  ;;  %v1323_v35 = vsel %vm732_vm10, 1.0, %v1516_v17  ;;  %1427 = vmatpush3.msra.mxu1 %v1568_v4 }
  0xa0   : > { %1421 = vmatprep.mubr.msk.f32.mxu0 %vm264_vm0, %v1319_v34  ;;  %1428 = vmatprep.mubr.msk.f32.mxu1 %vm264_vm0, %v1323_v35  ;;  %v1343_v35 = vld [vmem:[%s1694_s4] ss:$0 sm:$0xff] }
  0xa1   : > { %v636_v36 = vpop.permute.xlu1 %635  ;;  %1438 = vmatprep.subr.mxu1 %v1566_v3 }
  0xa2   : > { %vm638_vm11 = vcmp.eq.s32.totalorder %v1580_v14, %v636_v36  ;;  %v826_v38 = vpop.permute.xlu0 %825 }
  0xa3   : > { %v1320_v37 = vsel %vm638_vm11, 1.0, %v1516_v17  ;;  %vm828_vm13 = vcmp.eq.s32.totalorder %v1580_v14, %v826_v38 }
  0xa4   : > { %1422 = vmatmul.mubr.msk.f32.vlgmr.msra.gmra.mxu0 %vm264_vm0, %v1320_v37  ;;  %v1328_v43 = vsel %vm828_vm13, 1.0, %v1516_v17 }
  0xa5   : > { %1432 = vmatpush3.msra.mxu0 %v1566_v3 }
  0xa6   : > { %v731_v39 = vpop.permute.xlu1 %730  ;;  %1433 = vmatprep.subr.mxu0 %v1568_v4 }
  0xa7   : > { %vm733_vm12 = vcmp.eq.s32.totalorder %v1580_v14, %v731_v39  ;;  %1434 = vmatpush3.msra.mxu0 %v1568_v4  ;;  %v1013_v40 = vpop.permute.xlu0 %1012 }
  0xa8   : > { %v1324_v41 = vsel %vm733_vm12, 1.0, %v1516_v17  ;;  %1445 = vmatprep.subr.mxu0 %v1566_v3  ;;  %vm1017_vm14 = vcmp.eq.s32.totalorder %v1580_v14, %v1013_v40 }
  0xa9   : > { %1429 = vmatmul.mubr.msk.f32.vlgmr.msra.gmra.mxu1 %vm264_vm0, %v1324_v41  ;;  %v1335_v45 = vsel %vm1017_vm14, 1.0, %v1516_v17 }
  0xaa   : > { %1439 = vmatpush3.msra.mxu1 %v1566_v3 }
  0xab   : > { %v823_v42 = vpop.permute.xlu1 %822  ;;  %1440 = vmatprep.subr.mxu1 %v1568_v4 }
  0xac   : > { %vm827_vm15 = vcmp.eq.s32.totalorder %v1580_v14, %v823_v42  ;;  %1441 = vmatpush3.msra.mxu1 %v1568_v4 }
  0xad   : > { %v1327_v44 = vsel %vm827_vm15, 1.0, %v1516_v17  ;;  %1452 = vmatprep.subr.bf16.mxu1 %v1516_v17 }
  0xae   : > { %1435 = vmatprep.mubr.msk.f32.mxu0 %vm264_vm0, %v1327_v44 }
  0xaf   : > { %1436 = vmatmul.mubr.msk.f32.vlgmr.msra.gmra.mxu0 %vm264_vm0, %v1328_v43 }
  0xb0   : > { %v918_v46 = vpop.permute.xlu1 %917  ;;  %1446 = vmatpush3.msra.mxu0 %v1566_v3  ;;  %1449 = vmatprep.mubr.msk.f32.mxu0 %vm264_vm0, %v1335_v45 }
  0xb1   : > { %vm922_vm1 = vcmp.eq.s32.totalorder %v1580_v14, %v918_v46  ;;  %1447 = vmatprep.subr.mxu0 %v1568_v4 }
  0xb2   : > { %v1331_v47 = vsel %vm922_vm1, 1.0, %v1516_v17  ;;  %1448 = vmatpush3.msra.mxu0 %v1568_v4 }
  0xb3   : > { %1442 = vmatprep.mubr.msk.f32.mxu1 %vm264_vm0, %v1331_v47  ;;  %1458 = vmatprep.subr.bf16.mxu0 %v1516_v17 }
  0xb4   : > { %v921_v48 = vpop.permute.xlu1 %920 }
  0xb5   : > { %vm923_vm2 = vcmp.eq.s32.totalorder %v1580_v14, %v921_v48 }
  0xb6   : > { %v1332_v49 = vsel %vm923_vm2, 1.0, %v1516_v17 }
  0xb7   : > { %1443 = vmatmul.mubr.msk.f32.vlgmr.msra.gmra.mxu1 %vm264_vm0, %v1332_v49 }
  0xb8   : > { %1454 = vmatprep.mubr.msk.bf16.mxu1 %vm1517_vm4, %v1516_v17  ;;  %1453 = vmatpush3.bf16.msra.mxu1 %v1498_v54 }
  0xb9   : > { %v1016_v50 = vpop.permute.xlu1 %1015 }
  0xba   : > { %vm1018_vm3 = vcmp.eq.s32.totalorder %v1580_v14, %v1016_v50 }
  0xbb   : > { %v1336_v51 = vsel %vm1018_vm3, 1.0, %v1516_v17 }
  0xbc   : > { %1450 = vmatmul.mubr.msk.f32.vlgmr.msra.gmra.mxu0 %vm264_vm0, %v1336_v51 }
  0xbd   : > { %1459 = vmatpush3.bf16.msra.mxu0 %v1497_v52  ;;  %1460 = vmatprep.mubr.msk.bf16.mxu0 %vm1517_vm4, %v1516_v17 }
  0xc0   : > { %1461 = vmatmul.mubr.msk.bf16.vlgmr.msra.gmra.mxu0 %vm264_vm0, %v1108_v53 }
 0x151   : > { %v1395_v55 = vpop.f32.mrf.mxu0  ;;  %v1402_v56 = vpop.f32.mrf.mxu1 }
 0x152   : > { %v440_v63 = vmax.f32 %v1395_v55, %v1402_v56 }
 0x153   : > { %v337_v57 = vpop.f32.mrf.mxu0  ;;  %v430_v59 = vpop.f32.mrf.mxu1 }
 0x154   : > { %v439_v1 = vmax.f32 %v337_v57, %v430_v59 }
 0x157   : > { %v1409_v58 = vpop.f32.mrf.mxu0 }
 0x158   : > { %v535_v2 = vmax.f32 %v440_v63, %v1409_v58 }
 0x159   : > { %v525_v61 = vpop.f32.mrf.mxu0 }
 0x15a   : > { %v534_v7 = vmax.f32 %v439_v1, %v525_v61 }
 0x15c   : > { %v1416_v60 = vpop.f32.mrf.mxu1 }
 0x15d   : > { %v630_v8 = vmax.f32 %v535_v2, %v1416_v60 }
 0x15e   : > { %v620_v0 = vpop.f32.mrf.mxu1 }
 0x15f   : > { %v629_v10 = vmax.f32 %v534_v7, %v620_v0 }
 0x164   : > { %v1423_v62 = vpop.f32.mrf.mxu0 }
 0x165   : > { %v725_v11 = vmax.f32 %v630_v8, %v1423_v62 }
 0x166   : > { %v715_v6 = vpop.f32.mrf.mxu0 }
 0x167   : > { %v724_v13 = vmax.f32 %v629_v10, %v715_v6 }
 0x169   : > { %v1430_v5 = vpop.f32.mrf.mxu1 }
 0x16a   : > { %v820_v14 = vmax.f32 %v725_v11, %v1430_v5 }
 0x16b   : > { %v810_v12 = vpop.f32.mrf.mxu1 }
 0x16c   : > { %v819_v17 = vmax.f32 %v724_v13, %v810_v12 }
 0x16f   : > { %v1437_v9 = vpop.f32.mrf.mxu0 }
 0x170   : > { %v915_v18 = vmax.f32 %v820_v14, %v1437_v9 }
 0x171   : > { %v905_v16 = vpop.f32.mrf.mxu0 }
 0x172   : > { %v914_v20 = vmax.f32 %v819_v17, %v905_v16 }
 0x177   : > { %v1444_v15 = vpop.f32.mrf.mxu1 }
 0x178   : > { %v1010_v21 = vmax.f32 %v915_v18, %v1444_v15 }
 0x179   : > { %v1000_v19 = vpop.f32.mrf.mxu1 }
 0x17a   : > { %v1009_v23 = vmax.f32 %v914_v20, %v1000_v19 }
 0x17c   : > { %v1451_v22 = vpop.f32.mrf.mxu0 }
 0x17d   : > { %v1105_v24 = vmax.f32 %v1010_v21, %v1451_v22 }
 0x17e   : > { %v1095_v25 = vpop.f32.mrf.mxu0 }
 0x17f   : > { %v1104_v26 = vmax.f32 %v1009_v23, %v1095_v25  ;;  %v1107_v27 = vsub.f32 %v1105_v24, %v1566_v3 }
 0x180   : > { %v1207_v30 = vpop.f32.mrf.mxu0 }
 0x181   : > { %v1106_v28 = vsub.f32 %v1104_v26, %v1568_v4 }
 0x182   : > { %v1462_v31 = vpop.f32.mrf.mxu0 }
 0x183   : > { %v1111_v29 = vpack.c.bf16 %v1107_v27, %v1106_v28 }
 0x184   : > { %v1210_v32 = vpop.f32.mrf.mxu0 }
 0x185   : > { %1455 = vmatmul.mubr.msk.bf16.vlgmr.msra.gmra.mxu1 %vm264_vm0, %v1111_v29 }
 0x186   : > { %v1463_v33 = vpop.f32.mrf.mxu0 }
 0x245   : > { %v1157_v34 = vpop.f32.mrf.mxu1 }
 0x246   : > { %v1208_v36 = vadd.f32 %v1207_v30, %v1157_v34 }
 0x247   : > { %v1456_v3 = vpop.f32.mrf.mxu1 }
 0x248   : > { %v1221_v37 = vadd.f32 %v1343_v35, %v1208_v36 }
 0x249   : > { %v1160_v4 = vpop.f32.mrf.mxu1 }
 0x24a   : > { %1223 = vst.msk [vmem:[%s244_s10] sm:$0xff] %vm264_vm0, %v1221_v37  ;;  %v1211_v38 = vadd.f32 %v1210_v32, %v1160_v4 }
 0x24b   : > { %v1457_v39 = vpop.f32.mrf.mxu1 }
 0x24c   : > { %v1222_v40 = vadd.f32 %v1343_v35, %v1211_v38 }
 0x24e   : > { %1224 = vst.msk [vmem:[%s244_s10 + $0x8] sm:$0xff] %vm264_vm0, %v1222_v40 }
 0x24f PF: > { %s15_s18 = sadd.s32 1, %s1505_s18  }
 0x250   : > { %p12_p4 = scmp.ge.s32.totalorder %s15_s18, 4  }
 0x252   :  { %14 = sbr.rel (!%p12_p4) target bundleno = 1 (0x1), region = 73 }

</bundles_post_ra>
